<compile_context>
chip_gen: v5e
topology: v5e:2x2
jax: 0.10.0
libtpu: 0.0.40
codegen_flags: <defaults>
</compile_context>

<pallas_src>
import functools
import math

import jax
import jax.numpy as jnp
from jax.experimental import pallas as pl
from jax.experimental.pallas import tpu as pltpu


# ----------------------------------------------------------------------------
# Pallas kernel: batch-blocked deep-set acquisition net
# ----------------------------------------------------------------------------
def _gittins_base_kernel(xh_ref, yh_ref, hmask_ref, xc_ref, ap_ref,
                         w1x_ref, w1y_ref, b1_ref, w2_ref, b2_ref,
                         w3x_ref, w3a_ref, w3p_ref, b3_ref, w4_ref, b4_ref,
                         out_ref, *, tb, n_hist, n_cand):
    # xh_ref : (tb*n_hist, d)      bf16   history features
    # yh_ref : (tb*n_hist, 2)      bf16   [y_hist, log(cost_hist)]
    # hmask  : (tb, n_hist, 1)     f32    history mask (0/1)
    # xc_ref : (tb*n_cand, d)      bf16   candidate features
    # ap_ref : (tb*n_cand, 2)      bf16   acqf params
    # out_ref: (1, tb*n_cand)      f32    lane-dense acquisition values
    f32 = jnp.float32
    H = w2_ref.shape[1]

    # --- history encoder: split-weight concat ---------------------------------
    #     concat([x_hist, y_aug]) @ W1  ==  x_hist @ W1x + y_aug @ W1y
    h1 = (jnp.dot(xh_ref[...], w1x_ref[...], preferred_element_type=f32)
          + jnp.dot(yh_ref[...], w1y_ref[...], preferred_element_type=f32)
          + b1_ref[...])
    h1 = jnp.maximum(h1, 0.0)
    h2 = jnp.dot(h1.astype(w2_ref.dtype), w2_ref[...],
                 preferred_element_type=f32) + b2_ref[...]
    h2 = jnp.maximum(h2, 0.0)                               # (tb*n_hist, H) f32

    # --- masked mean pooling over the history axis -----------------------------
    m = hmask_ref[...]                                      # (tb, n_hist, 1)
    h2b = h2.reshape(tb, n_hist, H)                         # free: splits sublane dim
    pooled_sum = jnp.sum(h2b * m, axis=1)                   # (tb, H)
    denom = jnp.maximum(jnp.sum(m, axis=1), 1.0)            # (tb, 1)
    pooled = pooled_sum * pl.reciprocal(denom, approx=True)  # EUP slot

    # --- candidate decoder: split-weight concat --------------------------------
    #     concat([x_cand, acqf_params, pooled]) @ W3
    #       ==  x_cand @ W3x + acqf_params @ W3a + pooled @ W3p
    g_c = (jnp.dot(xc_ref[...], w3x_ref[...], preferred_element_type=f32)
           + jnp.dot(ap_ref[...], w3a_ref[...], preferred_element_type=f32))
    p_proj = jnp.dot(pooled.astype(w3p_ref.dtype), w3p_ref[...],
                     preferred_element_type=f32)            # (tb, H)
    g = g_c.reshape(tb, n_cand, H) + p_proj[:, None, :] + b3_ref[...][None]
    g = jnp.maximum(g, 0.0)                                 # (tb, n_cand, H)
    g_flat = g.reshape(tb * n_cand, H)                      # free: merges sublane dims

    # --- final H->1 projection as (1,H)·(tb*n_cand,H)^T -> lane-dense row ------
    out = jax.lax.dot_general(w4_ref[...], g_flat, (((1,), (1,)), ((), ())),
                              preferred_element_type=f32) + b4_ref[...]
    out_ref[...] = out                                      # (1, tb*n_cand) store


def _base_model_pallas(x_hist, y_hist_aug, x_cand, acqf_params, hist_mask,
                       params, *, num_blocks=1):
    """Deep-set base acquisition net via a Pallas kernel.

    x_hist     : [B, n_hist, d]       y_hist_aug : [B, n_hist, n_hist_out]
    x_cand     : [B, n_cand, d]       acqf_params: [B, n_cand, n_acqf_params]
    hist_mask  : [B, n_hist, 1]
    returns    : [B, n_cand, 1]

    num_blocks: batch blocks in the grid. 1 (default) is best on single-TC
    chips (v5e/v6e); use 2 on v7x to feed both TensorCores.
    """
    B, n_hist, d = x_hist.shape
    _, n_cand, _ = x_cand.shape
    n_hist_out = y_hist_aug.shape[-1]
    n_acqf = acqf_params.shape[-1]

    # Keep in-kernel (tb, n_seq, H) reshapes free of (8,128)-tile relayouts.
    assert n_hist % 8 == 0 and n_cand % 8 == 0, (
        "n_hist / n_cand must be multiples of 8 to avoid in-kernel relayout copies")

    # Number of batch blocks: largest divisor of B that is <= num_blocks (no padding).
    nb = max(1, min(int(num_blocks), B))
    while B % nb:
        nb -= 1
    tb = B // nb

    # Flatten batch*seq (metadata-only reshape) and cast MXU operands to bf16.
    xh = x_hist.reshape(B * n_hist, d).astype(jnp.bfloat16)
    yh = y_hist_aug.reshape(B * n_hist, n_hist_out).astype(jnp.bfloat16)
    xc = x_cand.reshape(B * n_cand, d).astype(jnp.bfloat16)
    ap = acqf_params.reshape(B * n_cand, n_acqf).astype(jnp.bfloat16)
    hm = hist_mask.astype(jnp.float32)

    H = params["w2"].shape[1]
    mxu_weights = {"w1x", "w1y", "w2", "w3x", "w3a", "w3p"}
    weight_order = ["w1x", "w1y", "b1", "w2", "b2",
                    "w3x", "w3a", "w3p", "b3", "w4", "b4"]
    weight_args = [params[k].astype(jnp.bfloat16) if k in mxu_weights
                   else params[k].astype(jnp.float32) for k in weight_order]

    # Raise the scoped-VMEM limit only when the single-block footprint needs it
    # (v5e default scoped limit is 16 MiB); toy sizes never trigger this.
    block_bytes = 4 * (tb * n_hist * (d + n_hist_out + 1 + 2 * H)
                       + tb * n_cand * (d + n_acqf + 2 * H))
    vmem_limit = None
    if block_bytes > 8 * 1024 * 1024:
        vmem_limit = min(2 * block_bytes + (8 << 20), 64 << 20)

    kernel = functools.partial(_gittins_base_kernel,
                               tb=tb, n_hist=n_hist, n_cand=n_cand)

    out = pl.pallas_call(
        kernel,
        out_shape=jax.ShapeDtypeStruct((nb, tb * n_cand), jnp.float32),
        grid=(nb,),
        in_specs=[
            pl.BlockSpec((tb * n_hist, d), lambda b: (b, 0)),
            pl.BlockSpec((tb * n_hist, n_hist_out), lambda b: (b, 0)),
            pl.BlockSpec((tb, n_hist, 1), lambda b: (b, 0, 0)),
            pl.BlockSpec((tb * n_cand, d), lambda b: (b, 0)),
            pl.BlockSpec((tb * n_cand, n_acqf), lambda b: (b, 0)),
        ] + [pl.BlockSpec(w.shape, lambda b: (0, 0)) for w in weight_args],
        out_specs=pl.BlockSpec((1, tb * n_cand), lambda b: (b, 0)),
        compiler_params=pltpu.CompilerParams(
            dimension_semantics=("parallel",),
            vmem_limit_bytes=vmem_limit),
    )(xh, yh, hm, xc, ap, *weight_args)

    return out.reshape(B, n_cand)[..., None]


# ----------------------------------------------------------------------------
# GittinsAcquisitionFunctionNet glue (plain JAX) + kernel call
# ----------------------------------------------------------------------------
def safe_log(x):
    if x is None:
        return None
    if isinstance(x, float):
        return math.log(x) if x > 0.0 else 0.0
    safe_x = jnp.where(x > 0, x, 1.0)
    return jnp.where(x > 0, jnp.log(safe_x), jnp.zeros_like(x))


def _ensure_trailing_dim(ref_x, t):
    if t is None:
        return None
    if t.ndim == ref_x.ndim - 1:
        t = t[..., None]
    return t


def gittins_acqf_forward(params, x_hist, y_hist, x_cand,
                         lambda_cand, cost_hist, cost_cand,
                         hist_mask=None, cand_mask=None, is_log=False,
                         num_blocks=1):
    """Forward pass of GittinsAcquisitionFunctionNet with variable_lambda=True,
    costs_in_history=True, cost_is_input=True, assume_y_independent_cost=False
    (so n_hist_out=2, n_acqf_params=2).

    NOTE: `is_log` and `num_blocks` must be static Python values under jit.
    """
    y_hist = _ensure_trailing_dim(x_hist, y_hist)
    cost_hist = _ensure_trailing_dim(x_hist, cost_hist)
    cost_cand = _ensure_trailing_dim(x_cand, cost_cand)
    if not isinstance(lambda_cand, float):
        lambda_cand = _ensure_trailing_dim(x_cand, lambda_cand)

    # --- costs_in_history: augment y_hist with log(cost_hist) (spec concat, dim=2)
    if not is_log:
        cost_hist = safe_log(cost_hist)
    y_hist_aug = jnp.concatenate([y_hist, cost_hist], axis=-1)        # [B, n_hist, 2]

    # --- acqf_params from lambda / candidate cost (spec concat, dim=2) ---
    if is_log:
        log_lambda_cand = lambda_cand
        log_cost_cand = cost_cand
    else:
        log_lambda_cand = safe_log(lambda_cand)
        log_cost_cand = safe_log(cost_cand)
    if isinstance(log_lambda_cand, float):
        log_lambda_cand = jnp.full(x_cand.shape[:-1] + (1,),
                                   log_lambda_cand, dtype=x_cand.dtype)
    lambda_cost_cand = log_lambda_cand + log_cost_cand
    acqf_params = jnp.concatenate([lambda_cost_cand, log_cost_cand],
                                  axis=-1)                            # [B, n_cand, 2]

    # --- default masks ---
    if hist_mask is None:
        hist_mask = jnp.ones(x_hist.shape[:-1] + (1,), dtype=jnp.float32)
    else:
        hist_mask = _ensure_trailing_dim(x_hist, hist_mask)
    # TODO(synk): cand_mask is accepted for interface parity but the synthetic
    # base net does not use it (masked-candidate outputs are ignored downstream).

    # --- call the Pallas kernel; no concat of the d-dim features (split weights)
    return _base_model_pallas(x_hist.astype(jnp.float32),
                              y_hist_aug.astype(jnp.float32),
                              x_cand.astype(jnp.float32),
                              acqf_params.astype(jnp.float32),
                              hist_mask.astype(jnp.float32),
                              params, num_blocks=num_blocks)


# ----------------------------------------------------------------------------
# Deterministic parameter init (synthetic, not a checkpoint)
# ----------------------------------------------------------------------------
def init_params(d, n_hist_out, n_acqf_params, hidden):
    """Split-weight parameterization:
      W1 = [W1x; W1y]  (history encoder input concat)
      W3 = [W3x; W3a; W3p]  (candidate decoder input concat with pooled feature)
    hidden=128 keeps every matmul K/N dim and elementwise vreg lane-dense.
    """
    key = jax.random.PRNGKey(42)
    keys = jax.random.split(key, 8)

    def lin(k, fan_in, fan_out):
        scale = 1.0 / jnp.sqrt(jnp.float32(fan_in))
        return jax.random.uniform(k, (fan_in, fan_out), jnp.float32,
                                  minval=-scale, maxval=scale)

    fan_h = d + n_hist_out
    fan_c = d + n_acqf_params + hidden
    return {
        "w1x": lin(keys[0], d, hidden) * jnp.sqrt(d / fan_h),
        "w1y": lin(keys[1], n_hist_out, hidden) * jnp.sqrt(n_hist_out / fan_h),
        "b1":  jnp.zeros((1, hidden), jnp.float32),
        "w2":  lin(keys[2], hidden, hidden),
        "b2":  jnp.zeros((1, hidden), jnp.float32),
        "w3x": lin(keys[3], d, hidden) * jnp.sqrt(d / fan_c),
        "w3a": lin(keys[4], n_acqf_params, hidden) * jnp.sqrt(n_acqf_params / fan_c),
        "w3p": lin(keys[5], hidden, hidden) * jnp.sqrt(hidden / fan_c),
        "b3":  jnp.zeros((1, hidden), jnp.float32),
        # final projection stored as a (1, H) row -> lane-dense (1, tb*n_cand) epilogue
        "w4":  lin(keys[6], hidden, 1).reshape(1, hidden),
        "b4":  jnp.zeros((1, 1), jnp.float32),
    }


# ----------------------------------------------------------------------------
if __name__ == "__main__":
    B, n_hist, n_cand, d, hidden = 16, 8, 8, 4, 128
    n_hist_out = 2      # y + log(cost_hist)
    n_acqf_params = 2   # [log(lambda)+log(cost_cand), log(cost_cand)]

    params = init_params(d, n_hist_out, n_acqf_params, hidden)

    key = jax.random.PRNGKey(0)
    k = jax.random.split(key, 6)
    x_hist = jax.random.normal(k[0], (B, n_hist, d), jnp.float32)
    y_hist = jax.random.normal(k[1], (B, n_hist, 1), jnp.float32)
    x_cand = jax.random.normal(k[2], (B, n_cand, d), jnp.float32)
    lambda_cand = jax.random.uniform(k[3], (B, n_cand, 1), jnp.float32,
                                     minval=0.01, maxval=1.0)
    cost_hist = jax.random.uniform(k[4], (B, n_hist, 1), jnp.float32,
                                   minval=0.1, maxval=2.0)
    cost_cand = jax.random.uniform(k[5], (B, n_cand, 1), jnp.float32,
                                   minval=0.1, maxval=2.0)
    hist_mask = jnp.ones((B, n_hist, 1), jnp.float32)
    cand_mask = jnp.ones((B, n_cand, 1), jnp.float32)

    # is_log / num_blocks are Python values -> static under jit.
    # num_blocks=1 (default) for v5e/v6e single-TC; set num_blocks=2 on v7x.
    fwd = jax.jit(gittins_acqf_forward, static_argnames=("is_log", "num_blocks"))
    out = fwd(params, x_hist, y_hist, x_cand, lambda_cand, cost_hist, cost_cand,
              hist_mask=hist_mask, cand_mask=cand_mask, is_log=False)
    jax.block_until_ready(out)

    assert out.shape == (B, n_cand, 1), out.shape
    assert bool(jnp.all(jnp.isfinite(out)))
    print("KERNEL_OK")
</pallas_src>

<mosaic_0001>
module attributes {stable_mosaic.version = 11 : i64} {
  func.func @_gittins_base_kernel(%arg0: i32, %arg1: memref<128x4xbf16, #tpu.memory_space<vmem>>, %arg2: memref<128x2xbf16, #tpu.memory_space<vmem>>, %arg3: memref<16x8x1xf32, #tpu.memory_space<vmem>>, %arg4: memref<128x4xbf16, #tpu.memory_space<vmem>>, %arg5: memref<128x2xbf16, #tpu.memory_space<vmem>>, %arg6: memref<4x128xbf16, #tpu.memory_space<vmem>>, %arg7: memref<2x128xbf16, #tpu.memory_space<vmem>>, %arg8: memref<1x128xf32, #tpu.memory_space<vmem>>, %arg9: memref<128x128xbf16, #tpu.memory_space<vmem>>, %arg10: memref<1x128xf32, #tpu.memory_space<vmem>>, %arg11: memref<4x128xbf16, #tpu.memory_space<vmem>>, %arg12: memref<2x128xbf16, #tpu.memory_space<vmem>>, %arg13: memref<128x128xbf16, #tpu.memory_space<vmem>>, %arg14: memref<1x128xf32, #tpu.memory_space<vmem>>, %arg15: memref<1x128xf32, #tpu.memory_space<vmem>>, %arg16: memref<1x1xf32, #tpu.memory_space<vmem>>, %arg17: memref<1x128xf32, #tpu.memory_space<vmem>>) attributes {dimension_semantics = [#tpu.dimension_semantics<parallel>], iteration_bounds = array<i64: 1>, scalar_prefetch = 0 : i64, scratch_operands = 0 : i64, tpu.core_type = #tpu.core_type<tc>, window_params = [{transform_indices = @transform_0, window_bounds = array<i64: 128, 4>}, {transform_indices = @transform_1, window_bounds = array<i64: 128, 2>}, {transform_indices = @transform_2, window_bounds = array<i64: 16, 8, 1>}, {transform_indices = @transform_3, window_bounds = array<i64: 128, 4>}, {transform_indices = @transform_4, window_bounds = array<i64: 128, 2>}, {pipeline_mode = #tpu.pipeline_mode<synchronous>, transform_indices = @transform_5, window_bounds = array<i64: 4, 128>}, {pipeline_mode = #tpu.pipeline_mode<synchronous>, transform_indices = @transform_6, window_bounds = array<i64: 2, 128>}, {pipeline_mode = #tpu.pipeline_mode<synchronous>, transform_indices = @transform_7, window_bounds = array<i64: 1, 128>}, {pipeline_mode = #tpu.pipeline_mode<synchronous>, transform_indices = @transform_8, window_bounds = array<i64: 128, 128>}, {pipeline_mode = #tpu.pipeline_mode<synchronous>, transform_indices = @transform_9, window_bounds = array<i64: 1, 128>}, {pipeline_mode = #tpu.pipeline_mode<synchronous>, transform_indices = @transform_10, window_bounds = array<i64: 4, 128>}, {pipeline_mode = #tpu.pipeline_mode<synchronous>, transform_indices = @transform_11, window_bounds = array<i64: 2, 128>}, {pipeline_mode = #tpu.pipeline_mode<synchronous>, transform_indices = @transform_12, window_bounds = array<i64: 128, 128>}, {pipeline_mode = #tpu.pipeline_mode<synchronous>, transform_indices = @transform_13, window_bounds = array<i64: 1, 128>}, {pipeline_mode = #tpu.pipeline_mode<synchronous>, transform_indices = @transform_14, window_bounds = array<i64: 1, 128>}, {pipeline_mode = #tpu.pipeline_mode<synchronous>, transform_indices = @transform_15, window_bounds = array<i64: 1, 1>}, {transform_indices = @transform_16, window_bounds = array<i64: 1, 128>}]} {
    %c0 = arith.constant 0 : index
    %c0_0 = arith.constant 0 : index
    %0 = vector.load %arg1[%c0, %c0_0] : memref<128x4xbf16, #tpu.memory_space<vmem>>, vector<128x4xbf16>
    %c0_1 = arith.constant 0 : index
    %c0_2 = arith.constant 0 : index
    %1 = vector.load %arg6[%c0_1, %c0_2] : memref<4x128xbf16, #tpu.memory_space<vmem>>, vector<4x128xbf16>
    %cst = arith.constant dense<0.000000e+00> : vector<128x128xf32>
    %2 = tpu.matmul %0, %1, %cst {dimension_numbers = #tpu.dot_dimension_numbers<[1], [0], [0], [1], [0, 0, 1, 1], [], []>} : vector<128x4xbf16>, vector<4x128xbf16>, vector<128x128xf32> -> vector<128x128xf32>
    %c0_3 = arith.constant 0 : index
    %c0_4 = arith.constant 0 : index
    %3 = vector.load %arg2[%c0_3, %c0_4] : memref<128x2xbf16, #tpu.memory_space<vmem>>, vector<128x2xbf16>
    %c0_5 = arith.constant 0 : index
    %c0_6 = arith.constant 0 : index
    %4 = vector.load %arg7[%c0_5, %c0_6] : memref<2x128xbf16, #tpu.memory_space<vmem>>, vector<2x128xbf16>
    %cst_7 = arith.constant dense<0.000000e+00> : vector<128x128xf32>
    %5 = tpu.matmul %3, %4, %cst_7 {dimension_numbers = #tpu.dot_dimension_numbers<[1], [0], [0], [1], [0, 0, 1, 1], [], []>} : vector<128x2xbf16>, vector<2x128xbf16>, vector<128x128xf32> -> vector<128x128xf32>
    %6 = arith.addf %2, %5 : vector<128x128xf32>
    %c0_8 = arith.constant 0 : index
    %c0_9 = arith.constant 0 : index
    %7 = vector.load %arg8[%c0_8, %c0_9] : memref<1x128xf32, #tpu.memory_space<vmem>>, vector<1x128xf32>
    %8 = vector.broadcast %7 : vector<1x128xf32> to vector<128x128xf32>
    %9 = arith.addf %6, %8 : vector<128x128xf32>
    %cst_10 = arith.constant 0.000000e+00 : f32
    %10 = vector.broadcast %cst_10 : f32 to vector<128x128xf32>
    %11 = arith.maximumf %9, %10 : vector<128x128xf32>
    %12 = arith.truncf %11 : vector<128x128xf32> to vector<128x128xbf16>
    %c0_11 = arith.constant 0 : index
    %c0_12 = arith.constant 0 : index
    %13 = vector.load %arg9[%c0_11, %c0_12] : memref<128x128xbf16, #tpu.memory_space<vmem>>, vector<128x128xbf16>
    %cst_13 = arith.constant dense<0.000000e+00> : vector<128x128xf32>
    %14 = tpu.matmul %12, %13, %cst_13 {dimension_numbers = #tpu.dot_dimension_numbers<[1], [0], [0], [1], [0, 0, 1, 1], [], []>} : vector<128x128xbf16>, vector<128x128xbf16>, vector<128x128xf32> -> vector<128x128xf32>
    %c0_14 = arith.constant 0 : index
    %c0_15 = arith.constant 0 : index
    %15 = vector.load %arg10[%c0_14, %c0_15] : memref<1x128xf32, #tpu.memory_space<vmem>>, vector<1x128xf32>
    %16 = vector.broadcast %15 : vector<1x128xf32> to vector<128x128xf32>
    %17 = arith.addf %14, %16 : vector<128x128xf32>
    %cst_16 = arith.constant 0.000000e+00 : f32
    %18 = vector.broadcast %cst_16 : f32 to vector<128x128xf32>
    %19 = arith.maximumf %17, %18 : vector<128x128xf32>
    %c0_17 = arith.constant 0 : index
    %c0_18 = arith.constant 0 : index
    %c0_19 = arith.constant 0 : index
    %20 = vector.load %arg3[%c0_17, %c0_18, %c0_19] : memref<16x8x1xf32, #tpu.memory_space<vmem>>, vector<16x8x1xf32>
    %21 = vector.shape_cast %19 : vector<128x128xf32> to vector<16x8x128xf32>
    %22 = vector.broadcast %20 : vector<16x8x1xf32> to vector<16x8x128xf32>
    %23 = arith.mulf %21, %22 : vector<16x8x128xf32>
    %cst_20 = arith.constant dense<0.000000e+00> : vector<16x128xf32>
    %24 = vector.multi_reduction <add>, %23, %cst_20 [1] : vector<16x8x128xf32> to vector<16x128xf32>
    %cst_21 = arith.constant dense<0.000000e+00> : vector<16x1xf32>
    %25 = vector.multi_reduction <add>, %20, %cst_21 [1] : vector<16x8x1xf32> to vector<16x1xf32>
    %cst_22 = arith.constant 1.000000e+00 : f32
    %26 = vector.broadcast %cst_22 : f32 to vector<16x1xf32>
    %27 = arith.maximumf %25, %26 : vector<16x1xf32>
    %28 = tpu.reciprocal %27 {approx = true} : vector<16x1xf32> -> vector<16x1xf32>
    %29 = vector.broadcast %28 : vector<16x1xf32> to vector<16x128xf32>
    %30 = arith.mulf %24, %29 : vector<16x128xf32>
    %c0_23 = arith.constant 0 : index
    %c0_24 = arith.constant 0 : index
    %31 = vector.load %arg4[%c0_23, %c0_24] : memref<128x4xbf16, #tpu.memory_space<vmem>>, vector<128x4xbf16>
    %c0_25 = arith.constant 0 : index
    %c0_26 = arith.constant 0 : index
    %32 = vector.load %arg11[%c0_25, %c0_26] : memref<4x128xbf16, #tpu.memory_space<vmem>>, vector<4x128xbf16>
    %cst_27 = arith.constant dense<0.000000e+00> : vector<128x128xf32>
    %33 = tpu.matmul %31, %32, %cst_27 {dimension_numbers = #tpu.dot_dimension_numbers<[1], [0], [0], [1], [0, 0, 1, 1], [], []>} : vector<128x4xbf16>, vector<4x128xbf16>, vector<128x128xf32> -> vector<128x128xf32>
    %c0_28 = arith.constant 0 : index
    %c0_29 = arith.constant 0 : index
    %34 = vector.load %arg5[%c0_28, %c0_29] : memref<128x2xbf16, #tpu.memory_space<vmem>>, vector<128x2xbf16>
    %c0_30 = arith.constant 0 : index
    %c0_31 = arith.constant 0 : index
    %35 = vector.load %arg12[%c0_30, %c0_31] : memref<2x128xbf16, #tpu.memory_space<vmem>>, vector<2x128xbf16>
    %cst_32 = arith.constant dense<0.000000e+00> : vector<128x128xf32>
    %36 = tpu.matmul %34, %35, %cst_32 {dimension_numbers = #tpu.dot_dimension_numbers<[1], [0], [0], [1], [0, 0, 1, 1], [], []>} : vector<128x2xbf16>, vector<2x128xbf16>, vector<128x128xf32> -> vector<128x128xf32>
    %37 = arith.addf %33, %36 : vector<128x128xf32>
    %38 = arith.truncf %30 : vector<16x128xf32> to vector<16x128xbf16>
    %c0_33 = arith.constant 0 : index
    %c0_34 = arith.constant 0 : index
    %39 = vector.load %arg13[%c0_33, %c0_34] : memref<128x128xbf16, #tpu.memory_space<vmem>>, vector<128x128xbf16>
    %cst_35 = arith.constant dense<0.000000e+00> : vector<16x128xf32>
    %40 = tpu.matmul %38, %39, %cst_35 {dimension_numbers = #tpu.dot_dimension_numbers<[1], [0], [0], [1], [0, 0, 1, 1], [], []>} : vector<16x128xbf16>, vector<128x128xbf16>, vector<16x128xf32> -> vector<16x128xf32>
    %41 = vector.shape_cast %37 : vector<128x128xf32> to vector<16x8x128xf32>
    %42 = vector.shape_cast %40 : vector<16x128xf32> to vector<16x1x128xf32>
    %43 = vector.broadcast %42 : vector<16x1x128xf32> to vector<16x8x128xf32>
    %44 = arith.addf %41, %43 : vector<16x8x128xf32>
    %c0_36 = arith.constant 0 : index
    %c0_37 = arith.constant 0 : index
    %45 = vector.load %arg14[%c0_36, %c0_37] : memref<1x128xf32, #tpu.memory_space<vmem>>, vector<1x128xf32>
    %46 = vector.shape_cast %45 : vector<1x128xf32> to vector<1x1x128xf32>
    %47 = vector.broadcast %46 : vector<1x1x128xf32> to vector<16x8x128xf32>
    %48 = arith.addf %44, %47 : vector<16x8x128xf32>
    %cst_38 = arith.constant 0.000000e+00 : f32
    %49 = vector.broadcast %cst_38 : f32 to vector<16x8x128xf32>
    %50 = arith.maximumf %48, %49 : vector<16x8x128xf32>
    %51 = vector.shape_cast %50 : vector<16x8x128xf32> to vector<128x128xf32>
    %c0_39 = arith.constant 0 : index
    %c0_40 = arith.constant 0 : index
    %52 = vector.load %arg15[%c0_39, %c0_40] : memref<1x128xf32, #tpu.memory_space<vmem>>, vector<1x128xf32>
    %cst_41 = arith.constant dense<0.000000e+00> : vector<1x128xf32>
    %53 = tpu.matmul %52, %51, %cst_41 {dimension_numbers = #tpu.dot_dimension_numbers<[1], [1], [0], [0], [0, 0, 1, 0], [], []>} : vector<1x128xf32>, vector<128x128xf32>, vector<1x128xf32> -> vector<1x128xf32>
    %c0_42 = arith.constant 0 : index
    %c0_43 = arith.constant 0 : index
    %54 = vector.load %arg16[%c0_42, %c0_43] : memref<1x1xf32, #tpu.memory_space<vmem>>, vector<1x1xf32>
    %55 = vector.broadcast %54 : vector<1x1xf32> to vector<1x128xf32>
    %56 = arith.addf %53, %55 : vector<1x128xf32>
    %c0_44 = arith.constant 0 : index
    %c0_45 = arith.constant 0 : index
    %57 = vector.load %arg17[%c0_44, %c0_45] : memref<1x128xf32, #tpu.memory_space<vmem>>, vector<1x128xf32>
    tpu.vector_store %arg17[%c0_44, %c0_45], %56 {strides = array<i32>} : memref<1x128xf32, #tpu.memory_space<vmem>>, vector<1x128xf32>,
    return
  }
  func.func @transform_0(%arg0: i32) -> (i32, i32) {
    %c0_i32 = arith.constant 0 : i32
    %c0_i32_0 = arith.constant 0 : i32
    return %arg0, %c0_i32 : i32, i32
  }
  func.func @transform_1(%arg0: i32) -> (i32, i32) {
    %c0_i32 = arith.constant 0 : i32
    %c0_i32_0 = arith.constant 0 : i32
    return %arg0, %c0_i32 : i32, i32
  }
  func.func @transform_2(%arg0: i32) -> (i32, i32, i32) {
    %c0_i32 = arith.constant 0 : i32
    %c0_i32_0 = arith.constant 0 : i32
    %c0_i32_1 = arith.constant 0 : i32
    return %arg0, %c0_i32, %c0_i32_0 : i32, i32, i32
  }
  func.func @transform_3(%arg0: i32) -> (i32, i32) {
    %c0_i32 = arith.constant 0 : i32
    %c0_i32_0 = arith.constant 0 : i32
    return %arg0, %c0_i32 : i32, i32
  }
  func.func @transform_4(%arg0: i32) -> (i32, i32) {
    %c0_i32 = arith.constant 0 : i32
    %c0_i32_0 = arith.constant 0 : i32
    return %arg0, %c0_i32 : i32, i32
  }
  func.func @transform_5(%arg0: i32) -> (i32, i32) {
    %c0_i32 = arith.constant 0 : i32
    %c0_i32_0 = arith.constant 0 : i32
    %c0_i32_1 = arith.constant 0 : i32
    return %c0_i32, %c0_i32_0 : i32, i32
  }
  func.func @transform_6(%arg0: i32) -> (i32, i32) {
    %c0_i32 = arith.constant 0 : i32
    %c0_i32_0 = arith.constant 0 : i32
    %c0_i32_1 = arith.constant 0 : i32
    return %c0_i32, %c0_i32_0 : i32, i32
  }
  func.func @transform_7(%arg0: i32) -> (i32, i32) {
    %c0_i32 = arith.constant 0 : i32
    %c0_i32_0 = arith.constant 0 : i32
    %c0_i32_1 = arith.constant 0 : i32
    return %c0_i32, %c0_i32_0 : i32, i32
  }
  func.func @transform_8(%arg0: i32) -> (i32, i32) {
    %c0_i32 = arith.constant 0 : i32
    %c0_i32_0 = arith.constant 0 : i32
    %c0_i32_1 = arith.constant 0 : i32
    return %c0_i32, %c0_i32_0 : i32, i32
  }
  func.func @transform_9(%arg0: i32) -> (i32, i32) {
    %c0_i32 = arith.constant 0 : i32
    %c0_i32_0 = arith.constant 0 : i32
    %c0_i32_1 = arith.constant 0 : i32
    return %c0_i32, %c0_i32_0 : i32, i32
  }
  func.func @transform_10(%arg0: i32) -> (i32, i32) {
    %c0_i32 = arith.constant 0 : i32
    %c0_i32_0 = arith.constant 0 : i32
    %c0_i32_1 = arith.constant 0 : i32
    return %c0_i32, %c0_i32_0 : i32, i32
  }
  func.func @transform_11(%arg0: i32) -> (i32, i32) {
    %c0_i32 = arith.constant 0 : i32
    %c0_i32_0 = arith.constant 0 : i32
    %c0_i32_1 = arith.constant 0 : i32
    return %c0_i32, %c0_i32_0 : i32, i32
  }
  func.func @transform_12(%arg0: i32) -> (i32, i32) {
    %c0_i32 = arith.constant 0 : i32
    %c0_i32_0 = arith.constant 0 : i32
    %c0_i32_1 = arith.constant 0 : i32
    return %c0_i32, %c0_i32_0 : i32, i32
  }
  func.func @transform_13(%arg0: i32) -> (i32, i32) {
    %c0_i32 = arith.constant 0 : i32
    %c0_i32_0 = arith.constant 0 : i32
    %c0_i32_1 = arith.constant 0 : i32
    return %c0_i32, %c0_i32_0 : i32, i32
  }
  func.func @transform_14(%arg0: i32) -> (i32, i32) {
    %c0_i32 = arith.constant 0 : i32
    %c0_i32_0 = arith.constant 0 : i32
    %c0_i32_1 = arith.constant 0 : i32
    return %c0_i32, %c0_i32_0 : i32, i32
  }
  func.func @transform_15(%arg0: i32) -> (i32, i32) {
    %c0_i32 = arith.constant 0 : i32
    %c0_i32_0 = arith.constant 0 : i32
    %c0_i32_1 = arith.constant 0 : i32
    return %c0_i32, %c0_i32_0 : i32, i32
  }
  func.func @transform_16(%arg0: i32) -> (i32, i32) {
    %c0_i32 = arith.constant 0 : i32
    %c0_i32_0 = arith.constant 0 : i32
    return %arg0, %c0_i32 : i32, i32
  }
}

</mosaic_0001>

<bundles_post_ra>
// kernel: gittins_acqf_forward.1
= control target key start
LH: loop header
LB: loop body
LE: loop exit
PB: predicated region body
PF: predicated region fallthrough
CT: control target
= control target key end

     0   :  { %vm155_vm0 = vcmask 1040384   ;;  %vm273_vm1 = vcmask 1041408   ;;  %vm130_vm2 = vcmask 15360   ;;  %vm248_vm3 = vcmask 31744   ;;  %s2369_s6 = inlined_call_operand.vmem [shape: bf16[2,128], index: 6, kind: input, shape index: {}]   ;;  %s2370_s1 = inlined_call_operand.vmem [shape: bf16[128,2], index: 1, kind: input, shape index: {}]   ;;  %s2371_s5 = inlined_call_operand.vmem [shape: bf16[4,128], index: 5, kind: input, shape index: {}]   ;;  %s2372_s7 = inlined_call_operand.vmem [shape: f32[1,128], index: 7, kind: input, shape index: {}]   ;;  %s2373_s0 = inlined_call_operand.vmem [shape: bf16[128,4], index: 0, kind: input, shape index: {}]   ;;  %s2374_s8 = inlined_call_operand.vmem [shape: bf16[128,128], index: 8, kind: input, shape index: {}]   ;;  %s2375_s2 = inlined_call_operand.vmem [shape: f32[16,8,1], index: 2, kind: input, shape index: {}]   ;;  %s2376_s9 = inlined_call_operand.vmem [shape: f32[1,128], index: 9, kind: input, shape index: {}]   ;;  %s2377_s15 = inlined_call_operand.<no memory space> [shape: f32[1,1], index: 15, kind: input, shape index: {}]   ;;  %s2378_s11 = inlined_call_operand.vmem [shape: bf16[2,128], index: 11, kind: input, shape index: {}]   ;;  %s2379_s4 = inlined_call_operand.vmem [shape: bf16[128,2], index: 4, kind: input, shape index: {}]   ;;  %s2380_s10 = inlined_call_operand.vmem [shape: bf16[4,128], index: 10, kind: input, shape index: {}]   ;;  %s2381_s3 = inlined_call_operand.vmem [shape: bf16[128,4], index: 3, kind: input, shape index: {}]   ;;  %s2382_s12 = inlined_call_operand.vmem [shape: bf16[128,128], index: 12, kind: input, shape index: {}]   ;;  %s2383_s13 = inlined_call_operand.vmem [shape: f32[1,128], index: 13, kind: input, shape index: {}]   ;;  %s2384_s14 = inlined_call_operand.vmem [shape: f32[1,128], index: 14, kind: input, shape index: {}]   ;;  %s2385_s16 = inlined_call_operand.vmem [shape: f32[1,128], index: 16, kind: output, shape index: {}]  }
   0x1   :  { %2386 = sst [smem:[#allocation3_spill]] %s2369_s6  ;;  %v1735_v2 = vld [vmem:[%s2370_s1 + $0x18] sm:$0xff]  ;;  %v1732_v3 = vld [vmem:[%s2370_s1] sm:$0xff]  ;;  %v1733_v7 = vld [vmem:[%s2370_s1 + $0x8] sm:$0xff]  ;;  %v1814_v28 = vmov 0   ;;  %vm711_vm4 = vcmask 7168  }
   0x2   :  { %s2387_s23 = sld [smem:[#allocation3_spill]]  ;;  %v72_v4 = vld [vmem:[%s2371_s5] sm:$0x3]  ;;  %v1734_v9 = vld [vmem:[%s2370_s1 + $0x10] sm:$0xff]  ;;  %v1725_v10 = vld [vmem:[%s2373_s0 + $0x8] sm:$0xff]  ;;  %1777 = vset.pattern.permute.xlu1 %v1814_v28  ;;  %1776 = vset.pattern.permute.xlu0 %v1814_v28  ;;  %vm1282_vm5 = vcmask 1041409  }
   0x3   :  { %v275_v5 = vsel %vm273_vm1, %v72_v4, 0  ;;  %v1736_v6 = vld [vmem:[%s2370_s1 + $0x20] sm:$0xff]  ;;  %v1726_v11 = vld [vmem:[%s2373_s0 + $0x10] sm:$0xff]  ;;  %v1737_v12 = vld [vmem:[%s2370_s1 + $0x28] sm:$0xff]  ;;  %1778 = vset.pattern.permute.xlu2 %v1814_v28  ;;  %vm1284_vm6 = vcmask 1042434   ;;  %vm1286_vm7 = vcmask 1043459  }
   0x4   :  { %v1724_v8 = vld [vmem:[%s2373_s0] sm:$0xff]  ;;  %v1727_v13 = vld [vmem:[%s2373_s0 + $0x18] sm:$0xff]  ;;  %v1738_v14 = vld [vmem:[%s2370_s1 + $0x30] sm:$0xff]  ;;  %vm1288_vm8 = vcmask 1044484   ;;  %vm1290_vm9 = vcmask 1045509   ;;  %vm1292_vm10 = vcmask 1046534  }
   0x5   :  { %v1728_v15 = vld [vmem:[%s2373_s0 + $0x20] sm:$0xff]  ;;  %v1739_v16 = vld [vmem:[%s2370_s1 + $0x38] sm:$0xff]  ;;  %v1729_v17 = vld [vmem:[%s2373_s0 + $0x28] sm:$0xff]  ;;  %vm1294_vm11 = vcmask 1047559  }
   0x6   :  { %v1747_v18 = vld [vmem:[%s2374_s8 + $0x38] sm:$0xff]  ;;  %v1746_v19 = vld [vmem:[%s2374_s8 + $0x30] sm:$0xff]  ;;  %v1745_v20 = vld [vmem:[%s2374_s8 + $0x28] sm:$0xff] }
   0x7   :  { %v1744_v21 = vld [vmem:[%s2374_s8 + $0x20] sm:$0xff]  ;;  %v1730_v22 = vld [vmem:[%s2373_s0 + $0x30] sm:$0xff]  ;;  %v1743_v24 = vld [vmem:[%s2374_s8 + $0x18] sm:$0xff] }
   0x8   :  { %v89_v0 = vld [vmem:[%s2387_s23] sm:$0x1]  ;;  %v1742_v25 = vld [vmem:[%s2374_s8 + $0x10] sm:$0xff]  ;;  %v1741_v27 = vld [vmem:[%s2374_s8 + $0x8] sm:$0xff] }
   0x9   :  { %v157_v1 = vsel %vm155_vm0, %v89_v0, 0  ;;  %v511_v29 = vld [vmem:[%s2375_s2 + $0x40] sm:$0xff]  ;;  %v1731_v33 = vld [vmem:[%s2373_s0 + $0x38] sm:$0xff]  ;;  %v512_v38 = vld [vmem:[%s2375_s2 + $0x48] sm:$0xff] }
   0xa   :  { %1772 = vmatpush.bf16.msra.mxu1 %v157_v1  ;;  %166 = vmatpush.bf16.msra.mxu0 %v157_v1  ;;  %v503_v30 = vld [vmem:[%s2375_s2] sm:$0xff]  ;;  %v768_v36 = vsel %vm711_vm4, %v511_v29, 0.0  ;;  %v504_v39 = vld [vmem:[%s2375_s2 + $0x8] sm:$0xff]  ;;  %v775_v40 = vsel %vm711_vm4, %v512_v38, 0.0  ;;  %v2022_v49 = vld [vmem:[%s2375_s2 + $0x58] sm:$0xff] }
   0xb   :  { %1773 = vmatpush.bf16.msra.mxu2 %v157_v1  ;;  %1774 = vmatpush.bf16.msra.mxu3 %v157_v1  ;;  %v1740_v31 = vld [vmem:[%s2374_s8] sm:$0xff]  ;;  %v712_v32 = vsel %vm711_vm4, %v503_v30, 0.0  ;;  %v769_v42 = vrot.slane %v768_v36, 4  ;;  %v776_v43 = vrot.slane %v775_v40, 4  ;;  %v506_v50 = vld [vmem:[%s2375_s2 + $0x18] sm:$0xff]  ;;  %v2032_v62 = vld [vmem:[%s2375_s2 + $0x28] sm:$0xff] }
   0xc   :  { %561 = vperm.xlu1 %1777, %v511_v29   ;;  %521 = vperm.xlu0 %1776, %v503_v30   ;;  %v713_v34 = vrot.slane %v712_v32, 4  ;;  %v733_v51 = vsel %vm711_vm4, %v506_v50, 0.0  ;;  %v515_v63 = vld [vmem:[%s2375_s2 + $0x60] sm:$0xff] }
   0xd   :  { %1535 = vmatmul.msk.bf16.vlgmr.msra.gmra.mxu1 %vm130_vm2, %v1735_v2  ;;  %1532 = vmatmul.msk.bf16.vlgmr.msra.gmra.mxu0 %vm130_vm2, %v1732_v3  ;;  %v770_v46 = vadd.f32 %v769_v42, %v768_v36  ;;  %v777_v47 = vadd.f32 %v776_v43, %v775_v40  ;;  %v734_v55 = vrot.slane %v733_v51, 4  ;;  %v2041_v1 = vld [vmem:[%s2372_s7] ss:$0 sm:$0xff]  ;;  %v796_v4 = vsel %vm711_vm4, %v515_v63, 0.0 }
   0xe   :  { %284 = vmatpush.bf16.msrb.mxu1 %v275_v5  ;;  %1537 = vmatmul.msk.bf16.vlgmr.msra.gmra.mxu2 %vm130_vm2, %v1737_v12  ;;  %v714_v37 = vadd.f32 %v713_v34, %v712_v32 }
   0xf   :  { %1539 = vmatmul.msk.bf16.vlgmr.msra.gmra.mxu3 %vm130_vm2, %v1739_v16  ;;  %438 = vmatpush.bf16.msrb.mxu2 %v1747_v18  ;;  %v771_v52 = vrot.slane %v770_v46, 2  ;;  %v778_v53 = vrot.slane %v777_v47, 2  ;;  %v735_v61 = vadd.f32 %v734_v55, %v733_v51 }
  0x10   :  { %v715_v44 = vrot.slane %v714_v37, 2 }
  0x11   :  { %v772_v58 = vadd.f32 %v771_v52, %v770_v46  ;;  %v779_v59 = vadd.f32 %v778_v53, %v777_v47  ;;  %v507_v52 = vld [vmem:[%s2375_s2 + $0x20] sm:$0xff] }
  0x12   :  { %v716_v48 = vadd.f32 %v715_v44, %v714_v37  ;;  %v518_v44 = vld [vmem:[%s2375_s2 + $0x78] sm:$0xff] }
  0x13   :  { %439 = vmatpush.bf16.msrb.mxu2 %v1746_v19  ;;  %v773_v2 = vrot.slane %v772_v58, 1  ;;  %v780_v3 = vrot.slane %v779_v59, 1  ;;  %v2053_v19 = vld [vmem:[%s2375_s2 + $0x70] sm:$0xff]  ;;  %v817_v55 = vsel %vm711_vm4, %v518_v44, 0.0 }
  0x14   :  { %566 = vperm.xlu1 %1777, %v512_v38   ;;  %526 = vperm.xlu0 %1776, %v504_v39   ;;  %v717_v54 = vrot.slane %v716_v48, 1 }
  0x16   :  { %v718_v60 = vadd.f32 %v717_v54, %v716_v48 }
  0x17   :  { %440 = vmatpush.bf16.msrb.mxu2 %v1745_v20  ;;  %v509_v20 = vld [vmem:[%s2375_s2 + $0x30] sm:$0xff] }
  0x18   :  { %v824_v5 = vmax.f32 %v718_v60, 1.0  ;;  %v754_v29 = vsel %vm711_vm4, %v509_v20, 0.0 }
  0x1a   :  { %1782 = vrcp.f32 %v824_v5 }
  0x1b   :  { %441 = vmatpush.bf16.msrb.mxu2 %v1744_v21 }
  0x1c   :  { %576 = vperm.xlu1 %1777, %v2022_v49   ;;  %536 = vperm.xlu0 %1776, %v506_v50  }
  0x1d   :  { %1536 = vmatmul.msk.bf16.gmra.mxu1 %vm130_vm2, %v1736_v6  ;;  %1533 = vmatmul.msk.bf16.gmra.mxu0 %vm130_vm2, %v1733_v7  ;;  %v736_v6 = vrot.slane %v735_v61, 2  ;;  %v797_v7 = vrot.slane %v796_v4, 4 }
  0x1e   :  { %1538 = vmatmul.msk.bf16.gmra.mxu2 %vm130_vm2, %v1738_v14  ;;  %v781_v14 = vadd.f32 %v780_v3, %v779_v59  ;;  %v818_v59 = vrot.slane %v817_v55, 4 }
  0x1f   :  { %442 = vmatpush.bf16.msrb.mxu2 %v1743_v24  ;;  %v798_v18 = vadd.f32 %v797_v7, %v796_v4 }
  0x20   :  { %v833_v28 = vmax.f32 %v781_v14, 1.0  ;;  %v1783_v38 = vpop.eup %1782 }
  0x21   :  { %v799_v32 = vrot.slane %v798_v18, 2 }
  0x23   :  { %443 = vmatpush.bf16.msrb.mxu2 %v1742_v25  ;;  %v513_v25 = vld [vmem:[%s2375_s2 + $0x50] sm:$0xff]  ;;  %v800_v43 = vadd.f32 %v799_v32, %v798_v18 }
  0x24   :  { %546 = vperm.xlu1 %1777, %v2032_v62   ;;  %581 = vperm.xlu0 %1776, %v515_v63   ;;  %v782_v37 = vsel %vm711_vm4, %v513_v25, 0.0 }
  0x27   :  { %444 = vmatpush.bf16.msrb.mxu2 %v1741_v27 }
  0x2b   :  { %445 = vmatpush.bf16.msrb.mxu2 %v1740_v31 }
  0x2c   :  { %591 = vperm.xlu1 %1777, %v2053_v19   ;;  %551 = vperm.xlu0 %1776, %v509_v20  }
  0x2d   :  { %1572 = vmatmul.msk.bf16.vlgmr.msrb.gmra.mxu1 %vm248_vm3, %v1724_v8  ;;  %1534 = vmatmul.msk.bf16.gmra.mxu0 %vm130_vm2, %v1734_v9 }
  0x34   :  { %596 = vperm.xlu0 %1776, %v518_v44   ;;  %858 = vperm.xlu1 %1777, %v1783_v38  }
  0x3d   :  { %1573 = vmatmul.msk.bf16.gmra.mxu1 %vm248_vm3, %v1725_v10 }
  0x4d   :  { %1574 = vmatmul.msk.bf16.gmra.mxu1 %vm248_vm3, %v1726_v11  ;;  %v719_v11 = vsel %vm711_vm4, %v504_v39, 0.0 }
  0x4e   :  { %v720_v21 = vrot.slane %v719_v11, 4 }
  0x50   :  { %v721_v36 = vadd.f32 %v720_v21, %v719_v11 }
  0x52   :  { %v722_v47 = vrot.slane %v721_v36, 2 }
  0x54   :  { %v723_v63 = vadd.f32 %v722_v47, %v721_v36 }
  0x56   :  { %v724_v14 = vrot.slane %v723_v63, 1 }
  0x5d   :  { %1575 = vmatmul.msk.bf16.gmra.mxu1 %vm248_vm3, %v1727_v13  ;;  %v774_v13 = vadd.f32 %v773_v2, %v772_v58  ;;  %v801_v58 = vrot.slane %v800_v43, 1 }
  0x5f   :  { %v832_v27 = vmax.f32 %v774_v13, 1.0  ;;  %v819_v13 = vadd.f32 %v818_v59, %v817_v55 }
  0x61   :  { %1784 = vrcp.f32 %v832_v27 }
  0x62   :  { %1786 = vrcp.f32 %v833_v28 }
  0x6d   :  { %1576 = vmatmul.msk.bf16.gmra.mxu1 %vm248_vm3, %v1728_v15  ;;  %v505_v15 = vld [vmem:[%s2375_s2 + $0x10] sm:$0xff] }
  0x6e   :  { %531 = vperm.xlu2 %1778, %v505_v15   ;;  %v726_v39 = vsel %vm711_vm4, %v505_v15, 0.0 }
  0x6f   :  { %v727_v51 = vrot.slane %v726_v39, 4 }
  0x71   :  { %v728_v7 = vadd.f32 %v727_v51, %v726_v39 }
  0x73   :  { %v729_v21 = vrot.slane %v728_v7, 2 }
  0x76   :  { %571 = vperm.xlu2 %1778, %v513_v25  }
  0x7d   :  { %1577 = vmatmul.msk.bf16.gmra.mxu1 %vm248_vm3, %v1729_v17  ;;  %v737_v17 = vadd.f32 %v736_v6, %v735_v61  ;;  %v1785_v61 = vpop.eup %1784  ;;  %v789_v6 = vsel %vm711_vm4, %v2022_v49, 0.0  ;;  %v516_v49 = vld [vmem:[%s2375_s2 + $0x68] sm:$0xff] }
  0x7e   :  { %v1787_v3 = vpop.eup %1786  ;;  %541 = vperm.xlu2 %1778, %v507_v52   ;;  %v790_v15 = vrot.slane %v789_v6, 4  ;;  %898 = vperm.xlu0 %1776, %v1785_v61   ;;  %v803_v28 = vsel %vm711_vm4, %v516_v49, 0.0 }
  0x7f   :  { %v738_v31 = vrot.slane %v737_v17, 1  ;;  %903 = vperm.xlu1 %1777, %v1787_v3   ;;  %v804_v32 = vrot.slane %v803_v28, 4 }
  0x81   :  { %v739_v42 = vadd.f32 %v738_v31, %v737_v17  ;;  %v820_v31 = vrot.slane %v819_v13, 2  ;;  %v805_v39 = vadd.f32 %v804_v32, %v803_v28 }
  0x83   :  { %v821_v44 = vadd.f32 %v820_v31, %v819_v13 }
  0x86   :  { %586 = vperm.xlu2 %1778, %v516_v49  }
  0x8a   :  { %v1979_v23 = vpop.f32.mrf.mxu1  ;;  %v168_v41 = vpop.f32.mrf.mxu0 }
  0x8d   :  { %1578 = vmatmul.msk.bf16.gmra.mxu1 %vm248_vm3, %v1730_v22 }
  0x92   :  { %v1988_v26 = vpop.f32.mrf.mxu1  ;;  %v170_v56 = vpop.f32.mrf.mxu0 }
  0x9a   :  { %v2006_v35 = vpop.f32.mrf.mxu1  ;;  %v173_v12 = vpop.f32.mrf.mxu0 }
  0x9d   :  { %1579 = vmatmul.msk.bf16.gmra.mxu1 %vm248_vm3, %v1731_v33  ;;  %v755_v33 = vrot.slane %v754_v29, 4 }
  0x9f   :  { %v756_v40 = vadd.f32 %v755_v33, %v754_v29  ;;  %v725_v33 = vadd.f32 %v724_v14, %v723_v63 }
  0xa1   :  { %v757_v53 = vrot.slane %v756_v40, 2  ;;  %v825_v47 = vmax.f32 %v725_v33, 1.0 }
  0xa2   :  { %v2017_v45 = vpop.f32.mrf.mxu1  ;;  %v175_v46 = vpop.f32.mrf.mxu0 }
  0xaa   :  { %v286_v57 = vpop.f32.mrf.mxu1 }
  0xab   :  { %v287_v0 = vadd.f32 %v286_v57, %v168_v41  ;;  %v783_v41 = vrot.slane %v782_v37, 4  ;;  %v827_v57 = vmax.f32 %v739_v42, 1.0 }
  0xad   :  { %v330_v9 = vadd.f32 %v2041_v1, %v287_v0  ;;  %v784_v48 = vadd.f32 %v783_v41, %v782_v37  ;;  %1788 = vrcp.f32 %v827_v57  ;;  %v730_v41 = vadd.f32 %v729_v21, %v728_v7 }
  0xaf   :  { %v346_v22 = vmax.f32 %v330_v9, 0.0  ;;  %v785_v54 = vrot.slane %v784_v48, 2 }
  0xb1   :  { %v786_v2 = vadd.f32 %v785_v54, %v784_v48  ;;  %v510_v54 = vld [vmem:[%s2375_s2 + $0x38] sm:$0xff] }
  0xb2   :  { %v288_v8 = vpop.f32.mrf.mxu1  ;;  %v761_v57 = vsel %vm711_vm4, %v510_v54, 0.0  ;;  %556 = vperm.xlu2 %1778, %v510_v54  }
  0xb3   :  { %v289_v10 = vadd.f32 %v288_v8, %v170_v56  ;;  %v740_v56 = vsel %vm711_vm4, %v507_v52, 0.0  ;;  %v758_v8 = vadd.f32 %v757_v53, %v756_v40  ;;  %v787_v9 = vrot.slane %v786_v2, 1  ;;  %v1789_v38 = vpop.eup %1788 }
  0xb4   :  { %v741_v60 = vrot.slane %v740_v56, 4  ;;  %v747_v40 = vsel %vm711_vm4, %v2032_v62, 0.0  ;;  %873 = vperm.xlu1 %1777, %v1789_v38   ;;  %v731_v62 = vrot.slane %v730_v41, 1 }
  0xb5   :  { %v331_v16 = vadd.f32 %v2041_v1, %v289_v10  ;;  %v748_v52 = vrot.slane %v747_v40, 4 }
  0xb6   :  { %v742_v10 = vadd.f32 %v741_v60, %v740_v56  ;;  %v762_v60 = vrot.slane %v761_v57, 4 }
  0xb7   :  { %v347_v24 = vmax.f32 %v331_v16, 0.0  ;;  %v788_v16 = vadd.f32 %v787_v9, %v786_v2  ;;  %v749_v7 = vadd.f32 %v748_v52, %v747_v40  ;;  %v810_v9 = vsel %vm711_vm4, %v2053_v19, 0.0 }
  0xb8   :  { %v743_v17 = vrot.slane %v742_v10, 2 }
  0xb9   :  { %v362_v30 = vpack.c.bf16 %v347_v24, %v346_v22  ;;  %v178_v22 = vpop.f32.mrf.mxu0  ;;  %v759_v24 = vrot.slane %v758_v8, 1  ;;  %v834_v25 = vmax.f32 %v788_v16, 1.0  ;;  %v750_v21 = vrot.slane %v749_v7, 2 }
  0xba   :  { %v291_v34 = vpop.f32.mrf.mxu1  ;;  %v744_v27 = vadd.f32 %v743_v17, %v742_v10 }
  0xbb   :  { %446 = vmatmul.bf16.vlgmr.msrb.gmra.mxu2 %v362_v30  ;;  %v292_v50 = vadd.f32 %v291_v34, %v173_v12  ;;  %v802_v12 = vadd.f32 %v801_v58, %v800_v43  ;;  %v791_v34 = vadd.f32 %v790_v15, %v789_v6  ;;  %1790 = vrcp.f32 %v834_v25 }
  0xbc   :  { %v745_v37 = vrot.slane %v744_v27, 1  ;;  %v760_v42 = vadd.f32 %v759_v24, %v758_v8  ;;  %v822_v58 = vrot.slane %v821_v44, 1  ;;  %v763_v6 = vadd.f32 %v762_v60, %v761_v57 }
  0xbd   :  { %v332_v4 = vadd.f32 %v2041_v1, %v292_v50  ;;  %v836_v30 = vmax.f32 %v802_v12, 1.0  ;;  %v792_v48 = vrot.slane %v791_v34, 2  ;;  %v732_v8 = vadd.f32 %v731_v62, %v730_v41 }
  0xbe   :  { %v746_v43 = vadd.f32 %v745_v37, %v744_v27  ;;  %v830_v56 = vmax.f32 %v760_v42, 1.0  ;;  %v764_v13 = vrot.slane %v763_v6, 2  ;;  %v751_v31 = vadd.f32 %v750_v21, %v749_v7 }
  0xbf   :  { %v348_v18 = vmax.f32 %v332_v4, 0.0  ;;  %1792 = vrcp.f32 %v836_v30  ;;  %v793_v61 = vadd.f32 %v792_v48, %v791_v34  ;;  %v826_v49 = vmax.f32 %v732_v8, 1.0 }
  0xc0   :  { %v828_v50 = vmax.f32 %v746_v43, 1.0  ;;  %v752_v38 = vrot.slane %v751_v31, 1 }
  0xc1   :  { %v1791_v55 = vpop.eup %1790  ;;  %v180_v63 = vpop.f32.mrf.mxu0  ;;  %v794_v15 = vrot.slane %v793_v61, 1 }
  0xc2   :  { %v293_v0 = vpop.f32.mrf.mxu1  ;;  %1794 = vrcp.f32 %v828_v50  ;;  %908 = vperm.xlu0 %1776, %v1791_v55  }
  0xc3   :  { %v294_v5 = vadd.f32 %v293_v0, %v175_v46  ;;  %v806_v46 = vrot.slane %v805_v39, 2  ;;  %1796 = vrcp.f32 %v825_v47  ;;  %v795_v30 = vadd.f32 %v794_v15, %v793_v61 }
  0xc4   :  { %1798 = vrcp.f32 %v830_v56 }
  0xc5   :  { %v333_v11 = vadd.f32 %v2041_v1, %v294_v5  ;;  %v807_v53 = vadd.f32 %v806_v46, %v805_v39  ;;  %v1793_v2 = vpop.eup %1792  ;;  %v835_v37 = vmax.f32 %v795_v30, 1.0  ;;  %v753_v46 = vadd.f32 %v752_v38, %v751_v31  ;;  %v2106_v31 = vpop.permute.xlu1 %561 }
  0xc6   :  { %918 = vperm.xlu1 %1777, %v1793_v2  }
  0xc7   :  { %v349_v20 = vmax.f32 %v333_v11, 0.0  ;;  %v808_v59 = vrot.slane %v807_v53, 1  ;;  %v823_v11 = vadd.f32 %v822_v58, %v821_v44  ;;  %v829_v52 = vmax.f32 %v753_v46, 1.0 }
  0xc8   :  { %v1795_v14 = vpop.eup %1794 }
  0xc9   :  { %v363_v29 = vpack.c.bf16 %v349_v20, %v348_v18  ;;  %v809_v5 = vadd.f32 %v808_v59, %v807_v53  ;;  %v765_v18 = vadd.f32 %v764_v13, %v763_v6  ;;  %v1797_v20 = vpop.eup %1796  ;;  %v839_v19 = vmax.f32 %v823_v11, 1.0 }
  0xca   :  { %v296_v36 = vpop.f32.mrf.mxu1  ;;  %878 = vperm.xlu0 %1776, %v1795_v14   ;;  %v1799_v27 = vpop.eup %1798  ;;  %863 = vperm.xlu2 %1778, %v1797_v20  }
  0xcb   :  { %451 = vmatmul.bf16.gmra.mxu2 %v363_v29  ;;  %v297_v51 = vadd.f32 %v296_v36, %v178_v22  ;;  %v837_v12 = vmax.f32 %v809_v5, 1.0  ;;  %v811_v22 = vrot.slane %v810_v9, 4  ;;  %v766_v25 = vrot.slane %v765_v18, 1 }
  0xcd   :  { %v334_v3 = vadd.f32 %v2041_v1, %v297_v51  ;;  %1800 = vrcp.f32 %v837_v12  ;;  %v767_v29 = vadd.f32 %v766_v25, %v765_v18  ;;  %v812_v32 = vadd.f32 %v811_v22, %v810_v9  ;;  %v203_v25 = vpop.f32.mrf.mxu3 }
  0xce   :  { %1802 = vrcp.f32 %v826_v49  ;;  %888 = vperm.xlu1 %1777, %v1799_v27  }
  0xcf   :  { %v350_v16 = vmax.f32 %v334_v3, 0.0  ;;  %1804 = vrcp.f32 %v839_v19  ;;  %v831_v33 = vmax.f32 %v767_v29, 1.0  ;;  %v813_v39 = vrot.slane %v812_v32, 2 }
  0xd1   :  { %1806 = vrcp.f32 %v831_v33  ;;  %v814_v47 = vadd.f32 %v813_v39, %v812_v32  ;;  %v522_v32 = vpop.permute.xlu0 %521 }
  0xd2   :  { %v298_v0 = vpop.f32.mrf.mxu1  ;;  %1808 = vrcp.f32 %v835_v37 }
  0xd3   :  { %v299_v4 = vadd.f32 %v298_v0, %v180_v63  ;;  %v1801_v34 = vpop.eup %1800  ;;  %v815_v53 = vrot.slane %v814_v47, 1  ;;  %1810 = vrcp.f32 %v829_v52  ;;  %v193_v63 = vpop.f32.mrf.mxu2  ;;  %v968_v52 = vld [vmem:[%s2380_s10] sm:$0x3] }
  0xd4   :  { %923 = vperm.xlu0 %1776, %v1801_v34   ;;  %v1803_v40 = vpop.eup %1802 }
  0xd5   :  { %v335_v10 = vadd.f32 %v2041_v1, %v299_v4  ;;  %v1805_v42 = vpop.eup %1804  ;;  %868 = vperm.xlu2 %1778, %v1803_v40   ;;  %v816_v56 = vadd.f32 %v815_v53, %v814_v47  ;;  %v205_v33 = vpop.f32.mrf.mxu3  ;;  %v985_v47 = vld [vmem:[%s2378_s11] sm:$0x1]  ;;  %v1167_v53 = vsel %vm273_vm1, %v968_v52, 0 }
  0xd6   :  { %933 = vperm.xlu1 %1777, %v1805_v42   ;;  %1176 = vmatpush.bf16.msrb.mxu0 %v1167_v53 }
  0xd7   :  { %v351_v17 = vmax.f32 %v335_v10, 0.0  ;;  %v1807_v50 = vpop.eup %1806  ;;  %v838_v57 = vmax.f32 %v816_v56, 1.0 }
  0xd8   :  { %v1809_v55 = vpop.eup %1808 }
  0xd9   :  { %v364_v24 = vpack.c.bf16 %v351_v17, %v350_v16  ;;  %v1811_v58 = vpop.eup %1810  ;;  %1812 = vrcp.f32 %v838_v57 }
  0xda   :  { %v301_v28 = vpop.f32.mrf.mxu1 }
  0xdb   :  { %456 = vmatmul.bf16.gmra.mxu2 %v364_v24  ;;  %v302_v36 = vadd.f32 %v301_v28, %v1979_v23  ;;  %v195_v7 = vpop.f32.mrf.mxu2 }
  0xdc   :  { %893 = vperm.xlu0 %1776, %v1807_v50  }
  0xdd   :  { %v336_v43 = vadd.f32 %v2041_v1, %v302_v36  ;;  %913 = vperm.xlu2 %1778, %v1809_v55   ;;  %v532_v36 = vpop.permute.xlu2 %531  ;;  %v2136_v55 = vld [vmem:[%s2376_s9] ss:$0 sm:$0xff] }
  0xdf   :  { %v352_v23 = vmax.f32 %v336_v43, 0.0  ;;  %v1813_v5 = vpop.eup %1812  ;;  %v2110_v43 = vpop.permute.xlu1 %566 }
  0xe2   :  { %v303_v41 = vpop.f32.mrf.mxu1 }
  0xe3   :  { %v304_v44 = vadd.f32 %v303_v41, %v1988_v26  ;;  %v198_v15 = vpop.f32.mrf.mxu2 }
  0xe5   :  { %v337_v48 = vadd.f32 %v2041_v1, %v304_v44  ;;  %883 = vperm.xlu2 %1778, %v1811_v58   ;;  %v527_v44 = vpop.permute.xlu0 %526  ;;  %v2112_v46 = vpop.permute.xlu2 %571 }
  0xe7   :  { %v353_v51 = vmax.f32 %v337_v48, 0.0  ;;  %v1051_v48 = vsel %vm155_vm0, %v985_v47, 0  ;;  %v2118_v50 = vpop.permute.xlu1 %576 }
  0xe8   :  { %1060 = vmatpush.bf16.msrb.mxu3 %v1051_v48 }
  0xe9   :  { %v365_v54 = vpack.c.bf16 %v353_v51, %v352_v23 }
  0xea   :  { %v306_v62 = vpop.f32.mrf.mxu1 }
  0xeb   :  { %461 = vmatmul.bf16.gmra.mxu2 %v365_v54  ;;  %v307_v26 = vadd.f32 %v306_v62, %v2006_v35  ;;  %v21_v35 = vstv %s2377_s15  ;;  %v200_v20 = vpop.f32.mrf.mxu2  ;;  %v1748_v54 = vld [vmem:[%s2381_s3] sm:$0xff] }
  0xec   :  { %22 = vst [vmem:[#allocation2] sm:$0x1] %v21_v35  ;;  %1684 = vmatmul.msk.bf16.vlgmr.msrb.gmra.mxu0 %vm248_vm3, %v1748_v54 }
  0xed   :  { %v338_v60 = vadd.f32 %v2041_v1, %v307_v26  ;;  %928 = vperm.xlu2 %1778, %v1813_v5   ;;  %v537_v23 = vpop.permute.xlu0 %536  ;;  %v2123_v51 = vpop.permute.xlu2 %541 }
  0xef   :  { %v354_v2 = vmax.f32 %v338_v60, 0.0  ;;  %v2139_v62 = vpop.permute.xlu1 %546 }
  0xf2   :  { %v308_v59 = vpop.f32.mrf.mxu1 }
  0xf3   :  { %v309_v61 = vadd.f32 %v308_v59, %v2017_v45  ;;  %v1468_v11 = vld [vmem:[#allocation2] sm:$0x1] }
  0xf5   :  { %v339_v0 = vadd.f32 %v2041_v1, %v309_v61  ;;  %1471 = vperm.xlu2 %1778, %v1468_v11   ;;  %v2141_v26 = vpop.permute.xlu0 %581  ;;  %v2144_v58 = vpop.permute.xlu2 %586  ;;  %v1757_v61 = vld [vmem:[%s2379_s4 + $0x8] sm:$0xff] }
  0xf7   :  { %v355_v3 = vmax.f32 %v339_v0, 0.0 }
  0xf9   :  { %v366_v4 = vpack.c.bf16 %v355_v3, %v354_v2 }
  0xfa   :  { %v311_v6 = vpop.f32.mrf.mxu1 }
  0xfb   :  { %466 = vmatmul.bf16.gmra.mxu2 %v366_v4  ;;  %v312_v8 = vadd.f32 %v311_v6, %v193_v63  ;;  %v2151_v4 = vpop.permute.xlu1 %591 }
  0xfd   :  { %v340_v9 = vadd.f32 %v2041_v1, %v312_v8  ;;  %v2153_v5 = vpop.permute.xlu0 %551  ;;  %v1749_v8 = vld [vmem:[%s2381_s3 + $0x8] sm:$0xff] }
  0xfe   :  { %1685 = vmatmul.msk.bf16.gmra.mxu0 %vm248_vm3, %v1749_v8 }
  0xff   :  { %v356_v13 = vmax.f32 %v340_v9, 0.0 }
 0x102   :  { %v313_v45 = vpop.f32.mrf.mxu1 }
 0x103   :  { %v314_v10 = vadd.f32 %v313_v45, %v195_v7 }
 0x105   :  { %v341_v12 = vadd.f32 %v2041_v1, %v314_v10 }
 0x107   :  { %v357_v14 = vmax.f32 %v341_v12, 0.0 }
 0x109   :  { %v367_v16 = vpack.c.bf16 %v357_v14, %v356_v13 }
 0x10a   :  { %v316_v17 = vpop.f32.mrf.mxu1 }
 0x10b   :  { %471 = vmatmul.bf16.gmra.mxu2 %v367_v16  ;;  %v317_v18 = vadd.f32 %v316_v17, %v198_v15 }
 0x10c   :  { %v2155_v7 = vpop.permute.xlu2 %556 }
 0x10d   :  { %v342_v49 = vadd.f32 %v2041_v1, %v317_v18  ;;  %v2162_v18 = vpop.permute.xlu0 %596 }
 0x10f   :  { %v358_v19 = vmax.f32 %v342_v49, 0.0 }
 0x112   :  { %v318_v21 = vpop.f32.mrf.mxu1 }
 0x113   :  { %v319_v22 = vadd.f32 %v318_v21, %v200_v20  ;;  %v859_v20 = vpop.permute.xlu1 %858 }
 0x115   :  { %v343_v24 = vadd.f32 %v2041_v1, %v319_v22 }
 0x117   :  { %v359_v27 = vmax.f32 %v343_v24, 0.0  ;;  %v1758_v24 = vld [vmem:[%s2379_s4 + $0x10] sm:$0xff] }
 0x119   :  { %v368_v28 = vpack.c.bf16 %v359_v27, %v358_v19 }
 0x11a   :  { %v321_v29 = vpop.f32.mrf.mxu1 }
 0x11b   :  { %476 = vmatmul.bf16.gmra.mxu2 %v368_v28  ;;  %v322_v30 = vadd.f32 %v321_v29, %v203_v25 }
 0x11d   :  { %v344_v37 = vadd.f32 %v2041_v1, %v322_v30 }
 0x11f   :  { %v360_v40 = vmax.f32 %v344_v37, 0.0 }
 0x122   :  { %v323_v34 = vpop.f32.mrf.mxu1 }
 0x123   :  { %v324_v38 = vadd.f32 %v323_v34, %v205_v33 }
 0x124   :  { %v864_v22 = vpop.permute.xlu2 %863 }
 0x125   :  { %v345_v39 = vadd.f32 %v2041_v1, %v324_v38  ;;  %v1756_v1 = vld [vmem:[%s2379_s4] sm:$0xff]  ;;  %v1750_v38 = vld [vmem:[%s2381_s3 + $0x10] sm:$0xff] }
 0x126   :  { %1644 = vmatmul.msk.bf16.vlgmr.msrb.gmra.mxu3 %vm130_vm2, %v1756_v1  ;;  %1686 = vmatmul.msk.bf16.gmra.mxu0 %vm248_vm3, %v1750_v38  ;;  %v2175_v1 = vpop.permute.xlu1 %903 }
 0x127   :  { %v361_v41 = vmax.f32 %v345_v39, 0.0 }
 0x129   :  { %v369_v42 = vpack.c.bf16 %v361_v41, %v360_v40 }
 0x12b   :  { %481 = vmatmul.bf16.gmra.mxu2 %v369_v42  ;;  %v2172_v42 = vpop.permute.xlu0 %898 }
 0x12f   :  { %v869_v54 = vpop.permute.xlu2 %868 }
 0x136   :  { %1645 = vmatmul.msk.bf16.gmra.mxu3 %vm130_vm2, %v1757_v61 }
 0x13e   :  { %v447_v56 = vpop.f32.mrf.mxu2 }
 0x13f   :  { %v448_v57 = vadd.f32 %v2136_v55, %v447_v56 }
 0x141   :  { %v487_v59 = vmax.f32 %v448_v57, 0.0 }
 0x143   :  { %v599_v60 = vmul.f32 %v522_v32, %v487_v59 }
 0x145   :  { %v615_v63 = vrot.slane %v599_v60, 4 }
 0x146   :  { %v449_v0 = vpop.f32.mrf.mxu2  ;;  %1646 = vmatmul.msk.bf16.gmra.mxu3 %vm130_vm2, %v1758_v24 }
 0x147   :  { %v616_v2 = vadd.f32 %v615_v63, %v599_v60  ;;  %v450_v3 = vadd.f32 %v2136_v55, %v449_v0 }
 0x149   :  { %v488_v6 = vmax.f32 %v450_v3, 0.0  ;;  %v617_v35 = vrot.slane %v616_v2, 2 }
 0x14b   :  { %v600_v45 = vmul.f32 %v527_v44, %v488_v6  ;;  %v618_v9 = vadd.f32 %v617_v35, %v616_v2  ;;  %v1759_v6 = vld [vmem:[%s2379_s4 + $0x18] sm:$0xff] }
 0x14d   :  { %v621_v10 = vrot.slane %v600_v45, 4  ;;  %v619_v11 = vrot.slane %v618_v9, 1 }
 0x14e   :  { %v452_v12 = vpop.f32.mrf.mxu2 }
 0x14f   :  { %v622_v13 = vadd.f32 %v621_v10, %v600_v45  ;;  %v453_v14 = vadd.f32 %v2136_v55, %v452_v12  ;;  %v620_v16 = vadd.f32 %v619_v11, %v618_v9  ;;  %v2183_v9 = vpop.permute.xlu0 %908 }
 0x151   :  { %v489_v15 = vmax.f32 %v453_v14, 0.0  ;;  %v623_v17 = vrot.slane %v622_v13, 2  ;;  %v936_v25 = vmul.f32 %v859_v20, %v620_v16  ;;  %v874_v14 = vpop.permute.xlu1 %873  ;;  %v1751_v20 = vld [vmem:[%s2381_s3 + $0x18] sm:$0xff] }
 0x152   :  { %1687 = vmatmul.msk.bf16.gmra.mxu0 %vm248_vm3, %v1751_v20 }
 0x153   :  { %v601_v21 = vmul.f32 %v532_v36, %v489_v15  ;;  %v624_v49 = vadd.f32 %v623_v17, %v622_v13  ;;  %v1218_v33 = vpack.c.bf16 %v936_v25, %v936_v25 }
 0x155   :  { %v627_v19 = vrot.slane %v601_v21, 4  ;;  %v625_v27 = vrot.slane %v624_v49, 1  ;;  %v1266_v44 = vunpack.c.l.b16 %v1218_v33 }
 0x156   :  { %v454_v28 = vpop.f32.mrf.mxu2  ;;  %1647 = vmatmul.msk.bf16.gmra.mxu3 %vm130_vm2, %v1759_v6 }
 0x157   :  { %v628_v29 = vadd.f32 %v627_v19, %v601_v21  ;;  %v455_v30 = vadd.f32 %v2136_v55, %v454_v28  ;;  %v626_v32 = vadd.f32 %v625_v27, %v624_v49  ;;  %v2193_v27 = vpop.permute.xlu2 %913 }
 0x159   :  { %v490_v34 = vmax.f32 %v455_v30, 0.0  ;;  %v937_v37 = vmul.f32 %v864_v22, %v626_v32  ;;  %v629_v36 = vrot.slane %v628_v29, 2 }
 0x15b   :  { %v602_v39 = vmul.f32 %v537_v23, %v490_v34  ;;  %v1219_v40 = vpack.c.bf16 %v937_v37, %v937_v37  ;;  %v630_v41 = vadd.f32 %v629_v36, %v628_v29  ;;  %v879_v34 = vpop.permute.xlu0 %878 }
 0x15d   :  { %v633_v47 = vrot.slane %v602_v39, 4  ;;  %v1267_v48 = vunpack.c.l.b16 %v1219_v40  ;;  %v631_v52 = vrot.slane %v630_v41, 1 }
 0x15e   :  { %v457_v53 = vpop.f32.mrf.mxu2 }
 0x15f   :  { %v634_v56 = vadd.f32 %v633_v47, %v602_v39  ;;  %v1283_v57 = vsel %vm1282_vm5, %v1267_v48, %v1266_v44  ;;  %v458_v23 = vadd.f32 %v2136_v55, %v457_v53  ;;  %v632_v59 = vadd.f32 %v631_v52, %v630_v41  ;;  %v1760_v41 = vld [vmem:[%s2379_s4 + $0x20] sm:$0xff]  ;;  %v2201_v52 = vpop.permute.xlu1 %918 }
 0x161   :  { %v491_v60 = vmax.f32 %v458_v23, 0.0  ;;  %v938_v61 = vmul.f32 %v869_v54, %v632_v59  ;;  %v635_v63 = vrot.slane %v634_v56, 2  ;;  %v884_v23 = vpop.permute.xlu2 %883 }
 0x163   :  { %v603_v0 = vmul.f32 %v2123_v51, %v491_v60  ;;  %v1220_v2 = vpack.c.bf16 %v938_v61, %v938_v61  ;;  %v636_v3 = vadd.f32 %v635_v63, %v634_v56  ;;  %v1752_v63 = vld [vmem:[%s2381_s3 + $0x20] sm:$0xff] }
 0x164   :  { %1688 = vmatmul.msk.bf16.gmra.mxu0 %vm248_vm3, %v1752_v63 }
 0x165   :  { %v639_v35 = vrot.slane %v603_v0, 4  ;;  %v1268_v8 = vunpack.c.l.b16 %v1220_v2  ;;  %v637_v45 = vrot.slane %v636_v3, 1 }
 0x166   :  { %v459_v10 = vpop.f32.mrf.mxu2  ;;  %1648 = vmatmul.msk.bf16.gmra.mxu3 %vm130_vm2, %v1760_v41  ;;  %v1754_v41 = vld [vmem:[%s2381_s3 + $0x30] sm:$0xff] }
 0x167   :  { %v640_v11 = vadd.f32 %v639_v35, %v603_v0  ;;  %v1285_v12 = vsel %vm1284_vm6, %v1268_v8, %v1283_v57  ;;  %v638_v13 = vadd.f32 %v637_v45, %v636_v3  ;;  %v460_v51 = vadd.f32 %v2136_v55, %v459_v10  ;;  %v2211_v45 = vpop.permute.xlu0 %923 }
 0x169   :  { %v939_v15 = vmul.f32 %v874_v14, %v638_v13  ;;  %v492_v16 = vmax.f32 %v460_v51, 0.0  ;;  %v641_v17 = vrot.slane %v640_v11, 2  ;;  %v889_v51 = vpop.permute.xlu1 %888 }
 0x16b   :  { %v1221_v21 = vpack.c.bf16 %v939_v15, %v939_v15  ;;  %v604_v49 = vmul.f32 %v2139_v62, %v492_v16  ;;  %v642_v22 = vadd.f32 %v641_v17, %v640_v11 }
 0x16d   :  { %v1269_v24 = vunpack.c.l.b16 %v1221_v21  ;;  %v645_v19 = vrot.slane %v604_v49, 4  ;;  %v643_v25 = vrot.slane %v642_v22, 1 }
 0x16e   :  { %v462_v28 = vpop.f32.mrf.mxu2 }
 0x16f   :  { %v1287_v29 = vsel %vm1286_vm7, %v1269_v24, %v1285_v12  ;;  %v646_v30 = vadd.f32 %v645_v19, %v604_v49  ;;  %v644_v32 = vadd.f32 %v643_v25, %v642_v22  ;;  %v463_v33 = vadd.f32 %v2136_v55, %v462_v28  ;;  %v1771_v19 = vld [vmem:[%s2382_s12 + $0x38] sm:$0xff]  ;;  %v894_v25 = vpop.permute.xlu0 %893 }
 0x170   :  { %1353 = vmatpush.bf16.msra.mxu1 %v1771_v19 }
 0x171   :  { %v940_v37 = vmul.f32 %v879_v34, %v644_v32  ;;  %v493_v36 = vmax.f32 %v463_v33, 0.0  ;;  %v647_v62 = vrot.slane %v646_v30, 2 }
 0x173   :  { %v1222_v38 = vpack.c.bf16 %v940_v37, %v940_v37  ;;  %v605_v39 = vmul.f32 %v2153_v5, %v493_v36  ;;  %v648_v40 = vadd.f32 %v647_v62, %v646_v30  ;;  %v1762_v37 = vld [vmem:[%s2379_s4 + $0x30] sm:$0xff] }
 0x174   :  { %v1770_v36 = vld [vmem:[%s2382_s12 + $0x30] sm:$0xff] }
 0x175   :  { %v1270_v44 = vunpack.c.l.b16 %v1222_v38  ;;  %v651_v47 = vrot.slane %v605_v39, 4  ;;  %v649_v48 = vrot.slane %v648_v40, 1  ;;  %1354 = vmatpush.bf16.msra.mxu1 %v1770_v36 }
 0x176   :  { %v464_v53 = vpop.f32.mrf.mxu2 }
 0x177   :  { %v1289_v54 = vsel %vm1288_vm8, %v1270_v44, %v1287_v29  ;;  %v652_v56 = vadd.f32 %v651_v47, %v605_v39  ;;  %v650_v57 = vadd.f32 %v649_v48, %v648_v40  ;;  %v465_v5 = vadd.f32 %v2136_v55, %v464_v53  ;;  %v1753_v29 = vld [vmem:[%s2381_s3 + $0x28] sm:$0xff]  ;;  %v1768_v53 = vld [vmem:[%s2382_s12 + $0x20] sm:$0xff] }
 0x178   :  { %1689 = vmatmul.msk.bf16.gmra.mxu0 %vm248_vm3, %v1753_v29  ;;  %v1769_v39 = vld [vmem:[%s2382_s12 + $0x28] sm:$0xff] }
 0x179   :  { %v941_v59 = vmul.f32 %v884_v23, %v650_v57  ;;  %v653_v60 = vrot.slane %v652_v56, 2  ;;  %v494_v61 = vmax.f32 %v465_v5, 0.0  ;;  %1355 = vmatpush.bf16.msra.mxu1 %v1769_v39 }
 0x17b   :  { %v1223_v0 = vpack.c.bf16 %v941_v59, %v941_v59  ;;  %v654_v2 = vadd.f32 %v653_v60, %v652_v56  ;;  %v606_v3 = vmul.f32 %v2155_v7, %v494_v61  ;;  %v1761_v7 = vld [vmem:[%s2379_s4 + $0x28] sm:$0xff]  ;;  %v1767_v61 = vld [vmem:[%s2382_s12 + $0x18] sm:$0xff] }
 0x17c   :  { %1649 = vmatmul.msk.bf16.gmra.mxu3 %vm130_vm2, %v1761_v7 }
 0x17d   :  { %v1271_v6 = vunpack.c.l.b16 %v1223_v0  ;;  %v655_v35 = vrot.slane %v654_v2, 1  ;;  %v657_v8 = vrot.slane %v606_v3, 4  ;;  %1356 = vmatpush.bf16.msra.mxu1 %v1768_v53 }
 0x17e   :  { %v467_v10 = vpop.f32.mrf.mxu2 }
 0x17f   :  { %v1291_v11 = vsel %vm1290_vm9, %v1271_v6, %v1289_v54  ;;  %v656_v12 = vadd.f32 %v655_v35, %v654_v2  ;;  %v658_v13 = vadd.f32 %v657_v8, %v606_v3  ;;  %v468_v44 = vadd.f32 %v2136_v55, %v467_v10  ;;  %v1763_v6 = vld [vmem:[%s2379_s4 + $0x38] sm:$0xff] }
 0x181   :  { %v942_v14 = vmul.f32 %v889_v51, %v656_v12  ;;  %v659_v15 = vrot.slane %v658_v13, 2  ;;  %v495_v57 = vmax.f32 %v468_v44, 0.0  ;;  %1357 = vmatpush.bf16.msra.mxu1 %v1767_v61 }
 0x183   :  { %v1224_v16 = vpack.c.bf16 %v942_v14, %v942_v14  ;;  %v660_v17 = vadd.f32 %v659_v15, %v658_v13  ;;  %v607_v0 = vmul.f32 %v2106_v31, %v495_v57  ;;  %v1765_v13 = vld [vmem:[%s2382_s12 + $0x8] sm:$0xff]  ;;  %v1755_v14 = vld [vmem:[%s2381_s3 + $0x38] sm:$0xff] }
 0x185   :  { %v1272_v20 = vunpack.c.l.b16 %v1224_v16  ;;  %v661_v21 = vrot.slane %v660_v17, 1 }
 0x186   :  { %v469_v49 = vpop.f32.mrf.mxu2 }
 0x187   :  { %v1293_v22 = vsel %vm1292_vm10, %v1272_v20, %v1291_v11  ;;  %v662_v24 = vadd.f32 %v661_v21, %v660_v17  ;;  %v470_v38 = vadd.f32 %v2136_v55, %v469_v49  ;;  %v1764_v49 = vld [vmem:[%s2382_s12] sm:$0xff] }
 0x188   :  { %1690 = vmatmul.msk.bf16.gmra.mxu0 %vm248_vm3, %v1754_v41 }
 0x189   :  { %v943_v28 = vmul.f32 %v894_v25, %v662_v24  ;;  %v496_v48 = vmax.f32 %v470_v38, 0.0 }
 0x18b   :  { %v1225_v30 = vpack.c.bf16 %v943_v28, %v943_v28  ;;  %v608_v59 = vmul.f32 %v2110_v43, %v496_v48  ;;  %v1766_v43 = vld [vmem:[%s2382_s12 + $0x10] sm:$0xff] }
 0x18c   :  { %1650 = vmatmul.msk.bf16.gmra.mxu3 %vm130_vm2, %v1762_v37  ;;  %1358 = vmatpush.bf16.msra.mxu1 %v1766_v43 }
 0x18d   :  { %v1273_v32 = vunpack.c.l.b16 %v1225_v30  ;;  %v669_v35 = vrot.slane %v608_v59, 4 }
 0x18e   :  { %v472_v33 = vpop.f32.mrf.mxu2 }
 0x18f   :  { %v2227_v34 = vsel %vm1294_vm11, %v1273_v32, %v1293_v22  ;;  %v473_v40 = vadd.f32 %v2136_v55, %v472_v33 }
 0x190   :  { %1359 = vmatpush.bf16.msra.mxu1 %v1765_v13 }
 0x191   :  { %v497_v54 = vmax.f32 %v473_v40, 0.0 }
 0x193   :  { %v609_v63 = vmul.f32 %v2112_v46, %v497_v54  ;;  %v663_v46 = vrot.slane %v607_v0, 4 }
 0x194   :  { %1360 = vmatpush.bf16.msra.mxu1 %v1764_v49 }
 0x195   :  { %v675_v8 = vrot.slane %v609_v63, 4  ;;  %v664_v15 = vadd.f32 %v663_v46, %v607_v0  ;;  %v1178_v0 = vpop.f32.mrf.mxu0 }
 0x196   :  { %v474_v62 = vpop.f32.mrf.mxu2 }
 0x197   :  { %v475_v47 = vadd.f32 %v2136_v55, %v474_v62  ;;  %v676_v51 = vadd.f32 %v675_v8, %v609_v63  ;;  %v665_v19 = vrot.slane %v664_v15, 2 }
 0x198   :  { %1691 = vmatmul.msk.bf16.gmra.mxu0 %vm248_vm3, %v1755_v14 }
 0x199   :  { %v498_v5 = vmax.f32 %v475_v47, 0.0  ;;  %v677_v22 = vrot.slane %v676_v51, 2  ;;  %v666_v36 = vadd.f32 %v665_v19, %v664_v15 }
 0x19b   :  { %v610_v2 = vmul.f32 %v2118_v50, %v498_v5  ;;  %v678_v37 = vadd.f32 %v677_v22, %v676_v51  ;;  %v667_v53 = vrot.slane %v666_v36, 1  ;;  %v929_v51 = vpop.permute.xlu2 %928 }
 0x19c   :  { %1651 = vmatmul.msk.bf16.gmra.mxu3 %vm130_vm2, %v1763_v6 }
 0x19d   :  { %v681_v31 = vrot.slane %v610_v2, 4  ;;  %v679_v47 = vrot.slane %v678_v37, 1 }
 0x19e   :  { %v477_v56 = vpop.f32.mrf.mxu2 }
 0x19f   :  { %v478_v23 = vadd.f32 %v2136_v55, %v477_v56  ;;  %v682_v16 = vadd.f32 %v681_v31, %v610_v2  ;;  %v680_v2 = vadd.f32 %v679_v47, %v678_v37 }
 0x1a1   :  { %v499_v60 = vmax.f32 %v478_v23, 0.0  ;;  %v683_v25 = vrot.slane %v682_v16, 2 }
 0x1a3   :  { %v611_v3 = vmul.f32 %v2141_v26, %v499_v60  ;;  %v670_v26 = vadd.f32 %v669_v35, %v608_v59  ;;  %v684_v62 = vadd.f32 %v683_v25, %v682_v16 }
 0x1a5   :  { %v687_v11 = vrot.slane %v611_v3, 4  ;;  %v671_v20 = vrot.slane %v670_v26, 2  ;;  %v685_v54 = vrot.slane %v684_v62, 1 }
 0x1a6   :  { %v479_v10 = vpop.f32.mrf.mxu2 }
 0x1a7   :  { %v480_v50 = vadd.f32 %v2136_v55, %v479_v10  ;;  %v688_v7 = vadd.f32 %v687_v11, %v611_v3  ;;  %v668_v3 = vadd.f32 %v667_v53, %v666_v36  ;;  %v686_v6 = vadd.f32 %v685_v54, %v684_v62 }
 0x1a9   :  { %v500_v12 = vmax.f32 %v480_v50, 0.0  ;;  %v689_v30 = vrot.slane %v688_v7, 2  ;;  %v1062_v63 = vpop.f32.mrf.mxu3  ;;  %v946_v50 = vmul.f32 %v2183_v9, %v680_v2  ;;  %v944_v11 = vmul.f32 %v2172_v42, %v668_v3 }
 0x1ab   :  { %v612_v17 = vmul.f32 %v2144_v58, %v500_v12  ;;  %v672_v58 = vadd.f32 %v671_v20, %v670_v26  ;;  %v690_v39 = vadd.f32 %v689_v30, %v688_v7  ;;  %v947_v26 = vmul.f32 %v2193_v27, %v686_v6 }
 0x1ac   :  { %v1228_v7 = vpack.c.bf16 %v946_v50, %v946_v50  ;;  %v1226_v9 = vpack.c.bf16 %v944_v11, %v944_v11 }
 0x1ad   :  { %v693_v21 = vrot.slane %v612_v17, 4  ;;  %v673_v40 = vrot.slane %v672_v58, 1  ;;  %v691_v5 = vrot.slane %v690_v39, 1  ;;  %v1229_v49 = vpack.c.bf16 %v947_v26, %v947_v26 }
 0x1ae   :  { %v482_v24 = vpop.f32.mrf.mxu2  ;;  %v1276_v25 = vunpack.c.l.b16 %v1228_v7 }
 0x1af   :  { %v694_v28 = vadd.f32 %v693_v21, %v612_v17  ;;  %v483_v29 = vadd.f32 %v2136_v55, %v482_v24  ;;  %v674_v23 = vadd.f32 %v673_v40, %v672_v58  ;;  %v692_v8 = vadd.f32 %v691_v5, %v690_v39 }
 0x1b1   :  { %v695_v32 = vrot.slane %v694_v28, 2  ;;  %v501_v33 = vmax.f32 %v483_v29, 0.0  ;;  %v945_v10 = vmul.f32 %v2175_v1, %v674_v23  ;;  %v948_v14 = vmul.f32 %v2201_v52, %v692_v8  ;;  %v1064_v17 = vpop.f32.mrf.mxu3  ;;  %v1180_v1 = vpop.f32.mrf.mxu0 }
 0x1b2   :  { %v2290_v21 = vadd.f32 %v1180_v1, %v1064_v17  ;;  %v1274_v52 = vunpack.c.l.b16 %v1226_v9  ;;  %v1277_v29 = vunpack.c.l.b16 %v1229_v49 }
 0x1b3   :  { %v613_v38 = vmul.f32 %v2151_v4, %v501_v33  ;;  %v696_v41 = vadd.f32 %v695_v32, %v694_v28  ;;  %v2281_v4 = vadd.f32 %v1178_v0, %v1062_v63  ;;  %v1227_v15 = vpack.c.bf16 %v945_v10, %v945_v10 }
 0x1b4   :  { %v1230_v22 = vpack.c.bf16 %v948_v14, %v948_v14 }
 0x1b5   :  { %v699_v44 = vrot.slane %v613_v38, 4  ;;  %v697_v59 = vrot.slane %v696_v41, 1  ;;  %v1275_v27 = vunpack.c.l.b16 %v1227_v15 }
 0x1b6   :  { %v484_v48 = vpop.f32.mrf.mxu2  ;;  %v1278_v58 = vunpack.c.l.b16 %v1230_v22 }
 0x1b7   :  { %v700_v56 = vadd.f32 %v699_v44, %v613_v38  ;;  %v485_v57 = vadd.f32 %v2136_v55, %v484_v48  ;;  %v698_v46 = vadd.f32 %v697_v59, %v696_v41  ;;  %v1296_v32 = vsel %vm1282_vm5, %v1275_v27, %v1274_v52 }
 0x1b8   :  { %v1297_v38 = vsel %vm1284_vm6, %v1276_v25, %v1296_v32 }
 0x1b9   :  { %v701_v60 = vrot.slane %v700_v56, 2  ;;  %v502_v61 = vmax.f32 %v485_v57, 0.0  ;;  %v1067_v36 = vpop.f32.mrf.mxu3  ;;  %v1183_v62 = vpop.f32.mrf.mxu0  ;;  %v1298_v41 = vsel %vm1286_vm7, %v1277_v29, %v1297_v38 }
 0x1ba   :  { %v2294_v40 = vadd.f32 %v1183_v62, %v1067_v36  ;;  %v1299_v47 = vsel %vm1288_vm8, %v1278_v58, %v1298_v41 }
 0x1bb   :  { %v702_v35 = vadd.f32 %v701_v60, %v700_v56  ;;  %v614_v43 = vmul.f32 %v2162_v18, %v502_v61  ;;  %v949_v18 = vmul.f32 %v2211_v45, %v698_v46  ;;  %v934_v45 = vpop.permute.xlu1 %933 }
 0x1bd   :  { %v703_v55 = vrot.slane %v702_v35, 1  ;;  %v705_v31 = vrot.slane %v614_v43, 4  ;;  %v1231_v24 = vpack.c.bf16 %v949_v18, %v949_v18 }
 0x1bf   :  { %v704_v12 = vadd.f32 %v703_v55, %v702_v35  ;;  %v706_v13 = vadd.f32 %v705_v31, %v614_v43  ;;  %v1279_v33 = vunpack.c.l.b16 %v1231_v24 }
 0x1c1   :  { %v707_v16 = vrot.slane %v706_v13, 2  ;;  %v950_v20 = vmul.f32 %v929_v51, %v704_v12  ;;  %v1300_v53 = vsel %vm1290_vm9, %v1279_v33, %v1299_v47  ;;  %v1069_v5 = vpop.f32.mrf.mxu3  ;;  %v1185_v23 = vpop.f32.mrf.mxu0 }
 0x1c2   :  { %v2302_v59 = vadd.f32 %v1185_v23, %v1069_v5 }
 0x1c3   :  { %v708_v42 = vadd.f32 %v707_v16, %v706_v13  ;;  %v1232_v28 = vpack.c.bf16 %v950_v20, %v950_v20 }
 0x1c5   :  { %v709_v19 = vrot.slane %v708_v42, 1  ;;  %v1280_v39 = vunpack.c.l.b16 %v1232_v28 }
 0x1c7   :  { %v710_v30 = vadd.f32 %v709_v19, %v708_v42  ;;  %v1301_v54 = vsel %vm1292_vm10, %v1280_v39, %v1300_v53 }
 0x1c9   :  { %v951_v37 = vmul.f32 %v934_v45, %v710_v30  ;;  %v1072_v60 = vpop.f32.mrf.mxu3  ;;  %v1188_v61 = vpop.f32.mrf.mxu0 }
 0x1ca   :  { %v2304_v63 = vadd.f32 %v1188_v61, %v1072_v60 }
 0x1cb   :  { %v1233_v44 = vpack.c.bf16 %v951_v37, %v951_v37  ;;  %v2329_v37 = vld [vmem:[%s2383_s13] ss:$0 sm:$0xff] }
 0x1cd   :  { %v1281_v48 = vunpack.c.l.b16 %v1233_v44 }
 0x1cf   :  { %v1302_v56 = vsel %vm1294_vm11, %v1281_v48, %v1301_v54 }
 0x1d0   :  { %v1303_v57 = vpack.c.b16 %v1302_v56, %v2227_v34 }
 0x1d1   :  { %v1074_v0 = vpop.f32.mrf.mxu3  ;;  %v1190_v2 = vpop.f32.mrf.mxu0 }
 0x1d2   :  { %1361 = vmatmul.bf16.vlgmr.msra.gmra.mxu1 %v1303_v57  ;;  %v2306_v3 = vadd.f32 %v1190_v2, %v1074_v0 }
 0x1d9   :  { %v1077_v6 = vpop.f32.mrf.mxu3  ;;  %v1193_v35 = vpop.f32.mrf.mxu0 }
 0x1da   :  { %v2308_v43 = vadd.f32 %v1193_v35, %v1077_v6 }
 0x1e1   :  { %v1079_v8 = vpop.f32.mrf.mxu3  ;;  %v1195_v10 = vpop.f32.mrf.mxu0 }
 0x1e2   :  { %v2310_v34 = vadd.f32 %v1195_v10, %v1079_v8 }
 0x1e9   :  { %v1082_v46 = vpop.f32.mrf.mxu3  ;;  %v1198_v55 = vpop.f32.mrf.mxu0 }
 0x1ea   :  { %v2312_v31 = vadd.f32 %v1198_v55, %v1082_v46 }
 0x1f1   :  { %v1084_v50 = vpop.f32.mrf.mxu3  ;;  %v1200_v11 = vpop.f32.mrf.mxu0 }
 0x1f2   :  { %v2314_v26 = vadd.f32 %v1200_v11, %v1084_v50 }
 0x1f9   :  { %v1203_v13 = vpop.f32.mrf.mxu0 }
 0x1ff   :  { %v1087_v12 = vpop.f32.mrf.mxu3 }
 0x200   :  { %v1204_v8 = vadd.f32 %v1203_v13, %v1087_v12 }
 0x201   :  { %v1205_v14 = vpop.f32.mrf.mxu0 }
 0x207   :  { %v1089_v51 = vpop.f32.mrf.mxu3 }
 0x208   :  { %v1206_v60 = vadd.f32 %v1205_v14, %v1089_v51 }
 0x209   :  { %v1208_v18 = vpop.f32.mrf.mxu0 }
 0x20f   :  { %v1092_v15 = vpop.f32.mrf.mxu3 }
 0x210   :  { %v1209_v53 = vadd.f32 %v1208_v18, %v1092_v15 }
 0x211   :  { %v1210_v17 = vpop.f32.mrf.mxu0 }
 0x217   :  { %v1094_v16 = vpop.f32.mrf.mxu3 }
 0x218   :  { %v1211_v62 = vadd.f32 %v1210_v17, %v1094_v16 }
 0x219   :  { %v1213_v7 = vpop.f32.mrf.mxu0 }
 0x21f   :  { %v1097_v1 = vpop.f32.mrf.mxu3 }
 0x220   :  { %v1214_v30 = vadd.f32 %v1213_v7, %v1097_v1 }
 0x221   :  { %v1215_v19 = vpop.f32.mrf.mxu0 }
 0x227   :  { %v1099_v24 = vpop.f32.mrf.mxu3 }
 0x228   :  { %v1216_v45 = vadd.f32 %v1215_v19, %v1099_v24 }
 0x24f   :  { %v2316_v20 = vpop.f32.mrf.mxu1 }
 0x250   :  { %v1369_v9 = vrot.slane %v2316_v20, 1  ;;  %v1383_v49 = vperm.slane %v2316_v20, 0  ;;  %v1375_v11 = vrot.slane %v2316_v20, 7  ;;  %v1374_v16 = vrot.slane %v2316_v20, 6 }
 0x251   :  { %v1373_v7 = vrot.slane %v2316_v20, 5 }
 0x252   :  { %v1384_v42 = vperm.slane %v1369_v9, 0  ;;  %v2321_v22 = vadd.f32 %v1383_v49, %v2281_v4  ;;  %v1390_v1 = vperm.slane %v1375_v11, 0  ;;  %v1389_v24 = vperm.slane %v1374_v16, 0 }
 0x254   :  { %v2324_v27 = vadd.f32 %v1384_v42, %v2290_v21  ;;  %v1422_v42 = vadd.f32 %v1390_v1, %v2310_v34  ;;  %v1370_v34 = vrot.slane %v2316_v20, 2 }
 0x257   :  { %v1364_v25 = vpop.f32.mrf.mxu1 }
 0x258   :  { %v1382_v28 = vrot.slane %v1364_v25, 7  ;;  %v1381_v52 = vrot.slane %v1364_v25, 6  ;;  %v1380_v29 = vrot.slane %v1364_v25, 5  ;;  %v1379_v21 = vrot.slane %v1364_v25, 4 }
 0x259   :  { %v1378_v39 = vrot.slane %v1364_v25, 3  ;;  %v1377_v54 = vrot.slane %v1364_v25, 2  ;;  %v1376_v61 = vrot.slane %v1364_v25, 1  ;;  %v1391_v18 = vperm.slane %v1364_v25, 0 }
 0x25a   :  { %v1398_v58 = vperm.slane %v1382_v28, 0  ;;  %v1397_v32 = vperm.slane %v1381_v52, 0  ;;  %v1396_v36 = vperm.slane %v1380_v29, 0  ;;  %v1395_v48 = vperm.slane %v1379_v21, 0 }
 0x25b   :  { %v1394_v23 = vperm.slane %v1378_v39, 0  ;;  %v1393_v35 = vperm.slane %v1377_v54, 0  ;;  %v1392_v50 = vperm.slane %v1376_v61, 0  ;;  %v1423_v13 = vadd.f32 %v1391_v18, %v2312_v31  ;;  %v1472_v54 = vpop.permute.xlu2 %1471 }
 0x25c   :  { %v1430_v33 = vadd.f32 %v1398_v58, %v1216_v45  ;;  %v1429_v4 = vadd.f32 %v1397_v32, %v1214_v30  ;;  %v1428_v47 = vadd.f32 %v1396_v36, %v1211_v62  ;;  %v1427_v5 = vadd.f32 %v1395_v48, %v1209_v53 }
 0x25d   :  { %v1426_v6 = vadd.f32 %v1394_v23, %v1206_v60  ;;  %v1425_v55 = vadd.f32 %v1393_v35, %v1204_v8  ;;  %v1424_v14 = vadd.f32 %v1392_v50, %v2314_v26  ;;  %v1443_v49 = vadd.f32 %v2329_v37, %v1423_v13 }
 0x25e   :  { %v1450_v38 = vadd.f32 %v2329_v37, %v1430_v33  ;;  %v1449_v44 = vadd.f32 %v2329_v37, %v1429_v4  ;;  %v1448_v57 = vadd.f32 %v2329_v37, %v1428_v47  ;;  %v1447_v2 = vadd.f32 %v2329_v37, %v1427_v5 }
 0x25f   :  { %v1446_v46 = vadd.f32 %v2329_v37, %v1426_v6  ;;  %v1445_v51 = vadd.f32 %v2329_v37, %v1425_v55  ;;  %v1444_v12 = vadd.f32 %v2329_v37, %v1424_v14  ;;  %v1372_v26 = vrot.slane %v2316_v20, 4 }
 0x260   :  { %v1466_v41 = vmax.f32 %v1450_v38, 0.0  ;;  %v1465_v56 = vmax.f32 %v1449_v44, 0.0  ;;  %v1464_v0 = vmax.f32 %v1448_v57, 0.0  ;;  %v1463_v10 = vmax.f32 %v1447_v2, 0.0 }
 0x261   :  { %v1462_v15 = vmax.f32 %v1446_v46, 0.0  ;;  %v1461_v17 = vmax.f32 %v1445_v51, 0.0  ;;  %v1460_v9 = vmax.f32 %v1444_v12, 0.0  ;;  %v1459_v19 = vmax.f32 %v1443_v49, 0.0 }
 0x262   :  { %1475 = vmatpush.xpose.msra.mxu3 %v1466_v41  ;;  %v1442_v25 = vadd.f32 %v2329_v37, %v1422_v42  ;;  %v1421_v28 = vadd.f32 %v1389_v24, %v2308_v43  ;;  %v1388_v52 = vperm.slane %v1373_v7, 0  ;;  %v1371_v31 = vrot.slane %v2316_v20, 3 }
 0x263   :  { %v1387_v58 = vperm.slane %v1372_v26, 0  ;;  %v1385_v38 = vperm.slane %v1370_v34, 0  ;;  %v1436_v47 = vadd.f32 %v2329_v37, %v2324_v27 }
 0x264   :  { %v1458_v29 = vmax.f32 %v1442_v25, 0.0  ;;  %v1441_v30 = vadd.f32 %v2329_v37, %v1421_v28  ;;  %v1420_v45 = vadd.f32 %v1388_v52, %v2306_v3  ;;  %v1386_v36 = vperm.slane %v1371_v31, 0 }
 0x265   :  { %v1419_v4 = vadd.f32 %v1387_v58, %v2304_v63  ;;  %v1417_v41 = vadd.f32 %v1385_v38, %v2294_v40  ;;  %v1452_v48 = vmax.f32 %v1436_v47, 0.0  ;;  %v1467_v40 = vld [vmem:[%s2384_s14] sm:$0x1] }
 0x266   :  { %1476 = vmatpush.xpose.msra.mxu3 %v1465_v56  ;;  %v1457_v32 = vmax.f32 %v1441_v30, 0.0  ;;  %v1440_v33 = vadd.f32 %v2329_v37, %v1420_v45  ;;  %v1418_v62 = vadd.f32 %v1386_v36, %v2302_v59  ;;  %v1435_v59 = vadd.f32 %v2329_v37, %v2321_v22 }
 0x267   :  { %v1439_v21 = vadd.f32 %v2329_v37, %v1419_v4  ;;  %v1437_v44 = vadd.f32 %v2329_v37, %v1417_v41  ;;  %v1474_v56 = vperm.slane %v1472_v54, 0 }
 0x268   :  { %v1456_v43 = vmax.f32 %v1440_v33, 0.0  ;;  %v1438_v3 = vadd.f32 %v2329_v37, %v1418_v62  ;;  %v1451_v53 = vmax.f32 %v1435_v59, 0.0 }
 0x269   :  { %v1455_v39 = vmax.f32 %v1439_v21, 0.0  ;;  %v1453_v63 = vmax.f32 %v1437_v44, 0.0 }
 0x26a   :  { %1477 = vmatpush.xpose.msra.mxu3 %v1464_v0  ;;  %v1454_v20 = vmax.f32 %v1438_v3, 0.0 }
 0x26e   :  { %1478 = vmatpush.xpose.msra.mxu3 %v1463_v10 }
 0x272   :  { %1479 = vmatpush.xpose.msra.mxu3 %v1462_v15 }
 0x276   :  { %1480 = vmatpush.xpose.msra.mxu3 %v1461_v17 }
 0x27a   :  { %1481 = vmatpush.xpose.msra.mxu3 %v1460_v9 }
 0x27e   :  { %1482 = vmatpush.xpose.msra.mxu3 %v1459_v19 }
 0x282   :  { %1483 = vmatpush.xpose.msra.mxu3 %v1458_v29 }
 0x286   :  { %1484 = vmatpush.xpose.msra.mxu3 %v1457_v32 }
 0x28a   :  { %1485 = vmatpush.xpose.msra.mxu3 %v1456_v43 }
 0x28e   :  { %1486 = vmatpush.xpose.msra.mxu3 %v1455_v39 }
 0x292   :  { %1487 = vmatpush.xpose.msra.mxu3 %v1454_v20 }
 0x296   :  { %1488 = vmatpush.xpose.msra.mxu3 %v1453_v63 }
 0x29a   :  { %1489 = vmatpush.xpose.msra.mxu3 %v1452_v48 }
 0x29e   :  { %1490 = vmatpush.xpose.msra.mxu3 %v1451_v53 }
 0x2a1   :  { %1491 = vmatmul.f32.vlgmr.msra.gmra.mxu3 %v1467_v40 }
 0x324   :  { %v1492_v57 = vpop.f32.mrf.mxu3 }
 0x325   :  { %v1493_v5 = vadd.f32 %v1492_v57, %v1474_v56 }
 0x327   :  { %1495 = vst [vmem:[%s2385_s16] sm:$0x1] %v1493_v5 }

</bundles_post_ra>
